<compile_context>
chip_gen: v7x
topology: tpu7x:2x2x1
jax: 0.10.0
libtpu: 0.0.40
codegen_flags: <defaults>
</compile_context>

<pallas_src>
import functools
import inspect

import jax
import jax.numpy as jnp
from jax import lax
from jax.experimental import pallas as pl
from jax.experimental.pallas import tpu as pltpu


def _round_up(x, m):
    return (x + m - 1) // m * m


def _sigmoid(x):
    # sigmoid(x) == 0.5 * (1 + tanh(x / 2)): one EUP transcendental per gate
    # instead of exp + reciprocal (the EUP has a single slot on all generations).
    return 0.5 * (jnp.tanh(0.5 * x) + 1.0)


def _invariant_spec(block_shape, index_map):
    """BlockSpec for (mostly) grid-invariant operands, single-buffered when the
    installed Pallas supports pipeline_mode.  Stops double-buffering W_hh
    (f32 W_hh at Hp=1024 is 16 MiB -> 32 MiB when double-buffered)."""
    try:
        if hasattr(pl, "Buffered") and \
                "pipeline_mode" in inspect.signature(pl.BlockSpec).parameters:
            return pl.BlockSpec(block_shape, index_map,
                                pipeline_mode=pl.Buffered(1))
    except (TypeError, ValueError):
        pass
    return pl.BlockSpec(block_shape, index_map)


def _lstm_recurrent_kernel(xg_ref, whh_ref, h0_ref, c0_ref,
                           out_ref, hN_ref, cN_ref,
                           *, hidden_pad, tc, unroll):
    """One grid step runs `tc` consecutive time steps for one batch block.

    xg_ref : (tc, Bb, 4*Hp) f32  precomputed x_t @ W_ih^T + (b_ih + b_hh),
                                 gate order (i, f, g, o), time-major.
    whh_ref: (Hp, 4*Hp)          recurrent weights (f32 or bf16), grid-invariant.
    h0_ref/c0_ref: (Bb, Hp)      initial state (read only at the first chunk).
    out_ref: (tc, Bb, Hp)        hidden outputs for this chunk (time-major).
    hN_ref/cN_ref: (Bb, Hp)      final state; constant block index along the
                                 time axis -> resident in VMEM across chunks,
                                 so they double as the carried state.
    """
    t_chunk = pl.program_id(1)

    @pl.when(t_chunk == 0)
    def _():
        hN_ref[...] = h0_ref[...]
        cN_ref[...] = c0_ref[...]

    Hp = hidden_pad
    whh = whh_ref[...]                       # hoisted out of the step loop

    def step(t, carry):
        h_prev, c_prev = carry               # carried in vregs, not VMEM
        # Only the recurrent matmul remains on the serial critical path.
        gates = xg_ref[t] + jnp.dot(h_prev.astype(whh.dtype), whh,
                                    preferred_element_type=jnp.float32)
        # Gate slices are lane-aligned because Hp is a multiple of 128.
        i_g = _sigmoid(gates[:, 0 * Hp:1 * Hp])
        f_g = _sigmoid(gates[:, 1 * Hp:2 * Hp])
        g_g = jnp.tanh(gates[:, 2 * Hp:3 * Hp])
        o_g = _sigmoid(gates[:, 3 * Hp:4 * Hp])
        c_new = f_g * c_prev + i_g * g_g
        h_new = o_g * jnp.tanh(c_new)
        out_ref[t] = h_new.astype(out_ref.dtype)   # lane-dense (Bb, Hp) store
        return (h_new, c_new)

    # Partial unroll: keeps LLO scheduling visibility without exploding vreg
    # pressure / code size at large Hp.
    h_fin, c_fin = lax.fori_loop(0, tc, step, (hN_ref[...], cN_ref[...]),
                                 unroll=min(unroll, tc))
    hN_ref[...] = h_fin
    cN_ref[...] = c_fin


def _pick_time_chunk(T, batch_block, Hp, budget_bytes=8 << 20, max_tc=64):
    """Largest divisor of T (<= max_tc) whose double-buffered xg + out chunks fit
    in `budget_bytes` of VMEM (conservative across v5e's 16 MiB scoped default,
    v6e's 32 MiB default and v7x's 64 MiB physical)."""
    b_sub = _round_up(max(batch_block, 1), 8)          # sublane-padded rows
    per_step = b_sub * (4 * Hp + Hp) * 4               # xg chunk + out chunk, f32
    best = 1
    for tc in range(1, min(T, max_tc) + 1):
        if T % tc == 0 and 2 * tc * per_step <= budget_bytes:
            best = tc
    return best


def lstm_encoder_forward(input_seq, params, h_0, c_0, *,
                         compute_dtype=None, time_chunk=None, unroll=None):
    """input_seq: (B, T, F) f32; h_0/c_0: (B, H).
    Returns (output (B,T,H), h (1,B,H), c (1,B,H)) like nn.LSTM(batch_first)."""
    B, T, F = input_seq.shape
    H = params["w_hh"].shape[0]                        # stored transposed: (H, 4H)
    assert params["w_hh"].shape == (H, 4 * H)
    assert params["w_ih"].shape == (F, 4 * H)

    # bf16 recurrent weights halve W_hh traffic / VMEM (mandatory at large H on
    # v7x's 64 MiB VMEM); gate/state math stays f32.  Default to f32 off-TPU so
    # the interpret/CPU path (no bf16 dot support) runs cleanly.
    if compute_dtype is None:
        compute_dtype = (jnp.bfloat16 if jax.default_backend() == "tpu"
                         else jnp.float32)

    Hp = _round_up(H, 128)                             # lane-aligned hidden size

    # v7x has 2 TensorCores: split the batch over 2 "parallel" blocks when each
    # half-batch stays sublane-aligned.  No effect on single-TC v5e/v6e.
    NB = 2 if (B % 16 == 0) else 1
    Bb = B // NB

    # --- pad parameters per gate block.  PADDING INVARIANT: zero-padded
    # W_ih / W_hh / bias gate columns => padded pre-activations are exactly 0;
    # zero-padded h_0/c_0 pad lanes => c pad stays 0 (f*0 + i*tanh(0) = 0) and
    # h pad stays 0, so the zero-padded W_hh input rows never leak.
    def pad_gates(w, lead_to):
        lead = w.shape[0]
        w4 = w.reshape(lead, 4, H)
        w4 = jnp.pad(w4, ((0, lead_to - lead), (0, 0), (0, Hp - H)))
        return w4.reshape(lead_to, 4 * Hp)

    w_ih_p = pad_gates(params["w_ih"], F)                        # (F, 4Hp)
    w_hh_p = pad_gates(params["w_hh"], Hp)                       # (Hp, 4Hp)
    bias_p = pad_gates(params["bias"].reshape(1, 4 * H), 1)[0]   # (4Hp,)

    h0_p = jnp.pad(h_0, ((0, 0), (0, Hp - H)))                   # (B, Hp)
    c0_p = jnp.pad(c_0, ((0, 0), (0, Hp - H)))                   # (B, Hp)

    # --- hoisted input projection on the UNPADDED batch (no 4x xg HBM waste):
    # one MXU-friendly f32 matmul for the whole sequence; 'btf,fg->tbg' also
    # absorbs the batch_first -> time_major transpose.
    xg = jnp.einsum("btf,fg->tbg", input_seq, w_ih_p,
                    preferred_element_type=jnp.float32)
    xg = xg + bias_p[None, None, :]                              # (T, B, 4Hp) f32

    if time_chunk is None:
        time_chunk = _pick_time_chunk(T, Bb, Hp)
    tc = time_chunk
    assert T % tc == 0, "time_chunk must divide the sequence length"

    if unroll is None:                       # scale unroll inversely with Hp
        unroll = 8 if Hp <= 256 else (4 if Hp <= 1024 else 2)

    whh_k = w_hh_p.astype(compute_dtype)

    # Explicit scoped-VMEM budget: W_hh (worst case double-buffered) +
    # double-buffered xg/out chunks + states, plus margin.
    b_sub = _round_up(Bb, 8)
    est = (2 * Hp * 4 * Hp * jnp.dtype(compute_dtype).itemsize
           + 2 * tc * b_sub * 4 * Hp * 4
           + 2 * tc * b_sub * Hp * 4
           + 6 * b_sub * Hp * 4)
    vmem_limit = int(min(100 << 20, max(32 << 20, est * 5 // 4 + (2 << 20))))

    kernel = functools.partial(_lstm_recurrent_kernel,
                               hidden_pad=Hp, tc=tc, unroll=unroll)

    out_tm, hN_p, cN_p = pl.pallas_call(
        kernel,
        out_shape=(
            jax.ShapeDtypeStruct((T, B, Hp), jnp.float32),   # time-major hidden
            jax.ShapeDtypeStruct((B, Hp), jnp.float32),      # final h
            jax.ShapeDtypeStruct((B, Hp), jnp.float32),      # final c
        ),
        grid_spec=pltpu.PrefetchScalarGridSpec(
            num_scalar_prefetch=0,
            grid=(NB, T // tc),
            in_specs=[
                pl.BlockSpec((tc, Bb, 4 * Hp), lambda b, t: (t, b, 0)),   # xg
                _invariant_spec((Hp, 4 * Hp), lambda b, t: (0, 0)),       # W_hh
                _invariant_spec((Bb, Hp), lambda b, t: (b, 0)),           # h_0
                _invariant_spec((Bb, Hp), lambda b, t: (b, 0)),           # c_0
            ],
            out_specs=[
                pl.BlockSpec((tc, Bb, Hp), lambda b, t: (t, b, 0)),       # out
                pl.BlockSpec((Bb, Hp), lambda b, t: (b, 0)),              # h_N
                pl.BlockSpec((Bb, Hp), lambda b, t: (b, 0)),              # c_N
            ],
        ),
        compiler_params=pltpu.CompilerParams(
            dimension_semantics=("parallel", "arbitrary"),   # batch, recurrence
            vmem_limit_bytes=vmem_limit,
        ),
    )(xg, whh_k, h0_p, c0_p)

    # One cheap wrapper transpose of the Hp-wide output keeps the kernel's
    # per-step stores lane-dense (no in-kernel relayout / hbuf scratch); the
    # 4x-wider xg stream dominates HBM traffic anyway.
    output = jnp.transpose(out_tm[:, :, :H], (1, 0, 2))          # (B, T, H)
    h = hN_p[:, :H][None, ...]                                    # (1, B, H)
    c = cN_p[:, :H][None, ...]                                    # (1, B, H)
    return output, h, c


def init_encoder_params(key, input_feature_len, hidden_size):
    """Deterministic init matching nn.LSTM parameter shapes (stored transposed)."""
    k1, k2, k3, k4 = jax.random.split(key, 4)
    bound = 1.0 / jnp.sqrt(hidden_size)
    # PyTorch: weight_ih_l0 (4H, F), weight_hh_l0 (4H, H), bias_ih/bias_hh (4H,)
    w_ih = jax.random.uniform(k1, (4 * hidden_size, input_feature_len),
                              jnp.float32, -bound, bound)
    w_hh = jax.random.uniform(k2, (4 * hidden_size, hidden_size),
                              jnp.float32, -bound, bound)
    b_ih = jax.random.uniform(k3, (4 * hidden_size,), jnp.float32, -bound, bound)
    b_hh = jax.random.uniform(k4, (4 * hidden_size,), jnp.float32, -bound, bound)
    return {
        "w_ih": jnp.transpose(w_ih),                 # (F, 4H)
        "w_hh": jnp.transpose(w_hh),                 # (H, 4H)
        "bias": b_ih + b_hh,                         # (4H,)
    }


def lstm_ref(x, params, h_0, c_0):
    """Pure-JAX reference of the same recurrence, for correctness checking."""
    H = params["w_hh"].shape[0]

    def step(carry, x_t):
        h, c = carry
        gates = x_t @ params["w_ih"] + h @ params["w_hh"] + params["bias"]
        i = jax.nn.sigmoid(gates[:, 0 * H:1 * H])
        f = jax.nn.sigmoid(gates[:, 1 * H:2 * H])
        g = jnp.tanh(gates[:, 2 * H:3 * H])
        o = jax.nn.sigmoid(gates[:, 3 * H:4 * H])
        c_new = f * c + i * g
        h_new = o * jnp.tanh(c_new)
        return (h_new, c_new), h_new

    (h_f, c_f), out_tm = lax.scan(step, (h_0, c_0), jnp.transpose(x, (1, 0, 2)))
    return jnp.transpose(out_tm, (1, 0, 2)), h_f[None], c_f[None]


if __name__ == "__main__":
    B, T, F, H = 2, 8, 4, 32          # batch, seq_len, input_feature_len, hidden

    key = jax.random.PRNGKey(0)
    k_param, k_x, k_h, k_c = jax.random.split(key, 4)

    params = init_encoder_params(k_param, F, H)
    x = jax.random.normal(k_x, (B, T, F), jnp.float32)
    # The PyTorch forward draws h_0 / c_0 from torch.randn each call; replicate
    # with deterministic host-side normal draws.
    # TODO(synk): torch.randn inside forward() has no in-kernel equivalent; the
    # random initial state is supplied by the wrapper instead.
    h_0 = jax.random.normal(k_h, (B, H), jnp.float32)
    c_0 = jax.random.normal(k_c, (B, H), jnp.float32)

    out_r, h_r, c_r = lstm_ref(x, params, h_0, c_0)

    # f32 path: tight numeric check against the pure-JAX scan reference.
    output, h, c = lstm_encoder_forward(x, params, h_0, c_0,
                                        compute_dtype=jnp.float32)
    jax.block_until_ready((output, h, c))
    assert output.shape == (B, T, H) and h.shape == (1, B, H) and c.shape == (1, B, H)
    assert jnp.allclose(output, out_r, atol=1e-4)
    assert jnp.allclose(h, h_r, atol=1e-4)
    assert jnp.allclose(c, c_r, atol=1e-4)

    # Default path (bf16 recurrent weights on TPU backends, f32 elsewhere):
    # looser tolerance, since bf16 W_hh + per-step h cast accumulate rounding.
    out_d, h_d, c_d = lstm_encoder_forward(x, params, h_0, c_0)
    jax.block_until_ready((out_d, h_d, c_d))
    assert jnp.allclose(out_d, out_r, atol=1e-1)
    assert jnp.allclose(h_d, h_r, atol=1e-1)
    assert jnp.allclose(c_d, c_r, atol=1e-1)

    print("KERNEL_OK")
</pallas_src>

<mosaic_0001>
module attributes {stable_mosaic.version = 11 : i64} {
  func.func @_lstm_recurrent_kernel(%arg0: i32, %arg1: i32, %arg2: memref<8x2x512xf32, #tpu.memory_space<vmem>>, %arg3: memref<128x512xf32, #tpu.memory_space<vmem>>, %arg4: memref<2x128xf32, #tpu.memory_space<vmem>>, %arg5: memref<2x128xf32, #tpu.memory_space<vmem>>, %arg6: memref<8x2x128xf32, #tpu.memory_space<vmem>>, %arg7: memref<2x128xf32, #tpu.memory_space<vmem>>, %arg8: memref<2x128xf32, #tpu.memory_space<vmem>>) attributes {dimension_semantics = [#tpu.dimension_semantics<parallel>, #tpu.dimension_semantics<arbitrary>], iteration_bounds = array<i64: 1, 1>, scalar_prefetch = 0 : i64, scratch_operands = 0 : i64, tpu.core_type = #tpu.core_type<tc>, window_params = [{transform_indices = @transform_0, window_bounds = array<i64: 8, 2, 512>}, {pipeline_mode = #tpu.pipeline_mode<synchronous>, transform_indices = @transform_1, window_bounds = array<i64: 128, 512>}, {pipeline_mode = #tpu.pipeline_mode<synchronous>, transform_indices = @transform_2, window_bounds = array<i64: 2, 128>}, {pipeline_mode = #tpu.pipeline_mode<synchronous>, transform_indices = @transform_3, window_bounds = array<i64: 2, 128>}, {transform_indices = @transform_4, window_bounds = array<i64: 8, 2, 128>}, {transform_indices = @transform_5, window_bounds = array<i64: 2, 128>}, {transform_indices = @transform_6, window_bounds = array<i64: 2, 128>}]} {
    %c0_i32 = arith.constant 0 : i32
    %0 = arith.cmpi eq, %arg1, %c0_i32 : i32
    %1 = arith.extui %0 : i1 to i32
    %c0_i32_0 = arith.constant 0 : i32
    %2 = arith.cmpi ne, %1, %c0_i32_0 : i32
    scf.if %2 {
      %c0_122 = arith.constant 0 : index
      %c0_123 = arith.constant 0 : index
      %328 = vector.load %arg4[%c0_122, %c0_123] : memref<2x128xf32, #tpu.memory_space<vmem>>, vector<2x128xf32>
      %c0_124 = arith.constant 0 : index
      %c0_125 = arith.constant 0 : index
      %329 = vector.load %arg7[%c0_124, %c0_125] : memref<2x128xf32, #tpu.memory_space<vmem>>, vector<2x128xf32>
      tpu.vector_store %arg7[%c0_124, %c0_125], %328 {strides = array<i32>} : memref<2x128xf32, #tpu.memory_space<vmem>>, vector<2x128xf32>,
      %c0_126 = arith.constant 0 : index
      %c0_127 = arith.constant 0 : index
      %330 = vector.load %arg5[%c0_126, %c0_127] : memref<2x128xf32, #tpu.memory_space<vmem>>, vector<2x128xf32>
      %c0_128 = arith.constant 0 : index
      %c0_129 = arith.constant 0 : index
      %331 = vector.load %arg8[%c0_128, %c0_129] : memref<2x128xf32, #tpu.memory_space<vmem>>, vector<2x128xf32>
      tpu.vector_store %arg8[%c0_128, %c0_129], %330 {strides = array<i32>} : memref<2x128xf32, #tpu.memory_space<vmem>>, vector<2x128xf32>,
    } else {
    }
    %c0 = arith.constant 0 : index
    %c0_1 = arith.constant 0 : index
    %3 = vector.load %arg3[%c0, %c0_1] : memref<128x512xf32, #tpu.memory_space<vmem>>, vector<128x512xf32>
    %c0_2 = arith.constant 0 : index
    %c0_3 = arith.constant 0 : index
    %4 = vector.load %arg7[%c0_2, %c0_3] : memref<2x128xf32, #tpu.memory_space<vmem>>, vector<2x128xf32>
    %c0_4 = arith.constant 0 : index
    %c0_5 = arith.constant 0 : index
    %5 = vector.load %arg8[%c0_4, %c0_5] : memref<2x128xf32, #tpu.memory_space<vmem>>, vector<2x128xf32>
    %c0_i32_6 = arith.constant 0 : i32
    %6 = arith.index_cast %c0_i32_6 : i32 to index
    %c0_7 = arith.constant 0 : index
    %c0_8 = arith.constant 0 : index
    %7 = vector.load %arg2[%6, %c0_7, %c0_8] : memref<8x2x512xf32, #tpu.memory_space<vmem>>, vector<1x2x512xf32>
    %8 = vector.shape_cast %7 : vector<1x2x512xf32> to vector<2x512xf32>
    %cst = arith.constant dense<0.000000e+00> : vector<2x512xf32>
    %9 = tpu.matmul %4, %3, %cst {dimension_numbers = #tpu.dot_dimension_numbers<[1], [0], [0], [1], [0, 0, 1, 1], [], []>} : vector<2x128xf32>, vector<128x512xf32>, vector<2x512xf32> -> vector<2x512xf32>
    %10 = arith.addf %8, %9 : vector<2x512xf32>
    %11 = vector.extract_strided_slice %10 {offsets = [0, 0], sizes = [2, 128], strides = [1, 1]} : vector<2x512xf32> to vector<2x128xf32>
    %cst_9 = arith.constant 5.000000e-01 : f32
    %12 = vector.broadcast %cst_9 : f32 to vector<2x128xf32>
    %13 = arith.mulf %12, %11 : vector<2x128xf32>
    %14 = math.tanh %13 : vector<2x128xf32>
    %cst_10 = arith.constant 1.000000e+00 : f32
    %15 = vector.broadcast %cst_10 : f32 to vector<2x128xf32>
    %16 = arith.addf %14, %15 : vector<2x128xf32>
    %cst_11 = arith.constant 5.000000e-01 : f32
    %17 = vector.broadcast %cst_11 : f32 to vector<2x128xf32>
    %18 = arith.mulf %17, %16 : vector<2x128xf32>
    %19 = vector.extract_strided_slice %10 {offsets = [0, 128], sizes = [2, 128], strides = [1, 1]} : vector<2x512xf32> to vector<2x128xf32>
    %cst_12 = arith.constant 5.000000e-01 : f32
    %20 = vector.broadcast %cst_12 : f32 to vector<2x128xf32>
    %21 = arith.mulf %20, %19 : vector<2x128xf32>
    %22 = math.tanh %21 : vector<2x128xf32>
    %cst_13 = arith.constant 1.000000e+00 : f32
    %23 = vector.broadcast %cst_13 : f32 to vector<2x128xf32>
    %24 = arith.addf %22, %23 : vector<2x128xf32>
    %cst_14 = arith.constant 5.000000e-01 : f32
    %25 = vector.broadcast %cst_14 : f32 to vector<2x128xf32>
    %26 = arith.mulf %25, %24 : vector<2x128xf32>
    %27 = vector.extract_strided_slice %10 {offsets = [0, 256], sizes = [2, 128], strides = [1, 1]} : vector<2x512xf32> to vector<2x128xf32>
    %28 = math.tanh %27 : vector<2x128xf32>
    %29 = vector.extract_strided_slice %10 {offsets = [0, 384], sizes = [2, 128], strides = [1, 1]} : vector<2x512xf32> to vector<2x128xf32>
    %cst_15 = arith.constant 5.000000e-01 : f32
    %30 = vector.broadcast %cst_15 : f32 to vector<2x128xf32>
    %31 = arith.mulf %30, %29 : vector<2x128xf32>
    %32 = math.tanh %31 : vector<2x128xf32>
    %cst_16 = arith.constant 1.000000e+00 : f32
    %33 = vector.broadcast %cst_16 : f32 to vector<2x128xf32>
    %34 = arith.addf %32, %33 : vector<2x128xf32>
    %cst_17 = arith.constant 5.000000e-01 : f32
    %35 = vector.broadcast %cst_17 : f32 to vector<2x128xf32>
    %36 = arith.mulf %35, %34 : vector<2x128xf32>
    %37 = arith.mulf %26, %5 : vector<2x128xf32>
    %38 = arith.mulf %18, %28 : vector<2x128xf32>
    %39 = arith.addf %37, %38 : vector<2x128xf32>
    %40 = math.tanh %39 : vector<2x128xf32>
    %41 = arith.mulf %36, %40 : vector<2x128xf32>
    %42 = arith.index_cast %c0_i32_6 : i32 to index
    %c0_18 = arith.constant 0 : index
    %c0_19 = arith.constant 0 : index
    %43 = vector.load %arg6[%42, %c0_18, %c0_19] : memref<8x2x128xf32, #tpu.memory_space<vmem>>, vector<1x2x128xf32>
    %44 = vector.shape_cast %43 : vector<1x2x128xf32> to vector<2x128xf32>
    %45 = vector.shape_cast %41 : vector<2x128xf32> to vector<1x2x128xf32>
    tpu.vector_store %arg6[%42, %c0_18, %c0_19], %45 {strides = array<i32>} : memref<8x2x128xf32, #tpu.memory_space<vmem>>, vector<1x2x128xf32>,
    %c1_i32 = arith.constant 1 : i32
    %46 = arith.index_cast %c1_i32 : i32 to index
    %c0_20 = arith.constant 0 : index
    %c0_21 = arith.constant 0 : index
    %47 = vector.load %arg2[%46, %c0_20, %c0_21] : memref<8x2x512xf32, #tpu.memory_space<vmem>>, vector<1x2x512xf32>
    %48 = vector.shape_cast %47 : vector<1x2x512xf32> to vector<2x512xf32>
    %cst_22 = arith.constant dense<0.000000e+00> : vector<2x512xf32>
    %49 = tpu.matmul %41, %3, %cst_22 {dimension_numbers = #tpu.dot_dimension_numbers<[1], [0], [0], [1], [0, 0, 1, 1], [], []>} : vector<2x128xf32>, vector<128x512xf32>, vector<2x512xf32> -> vector<2x512xf32>
    %50 = arith.addf %48, %49 : vector<2x512xf32>
    %51 = vector.extract_strided_slice %50 {offsets = [0, 0], sizes = [2, 128], strides = [1, 1]} : vector<2x512xf32> to vector<2x128xf32>
    %cst_23 = arith.constant 5.000000e-01 : f32
    %52 = vector.broadcast %cst_23 : f32 to vector<2x128xf32>
    %53 = arith.mulf %52, %51 : vector<2x128xf32>
    %54 = math.tanh %53 : vector<2x128xf32>
    %cst_24 = arith.constant 1.000000e+00 : f32
    %55 = vector.broadcast %cst_24 : f32 to vector<2x128xf32>
    %56 = arith.addf %54, %55 : vector<2x128xf32>
    %cst_25 = arith.constant 5.000000e-01 : f32
    %57 = vector.broadcast %cst_25 : f32 to vector<2x128xf32>
    %58 = arith.mulf %57, %56 : vector<2x128xf32>
    %59 = vector.extract_strided_slice %50 {offsets = [0, 128], sizes = [2, 128], strides = [1, 1]} : vector<2x512xf32> to vector<2x128xf32>
    %cst_26 = arith.constant 5.000000e-01 : f32
    %60 = vector.broadcast %cst_26 : f32 to vector<2x128xf32>
    %61 = arith.mulf %60, %59 : vector<2x128xf32>
    %62 = math.tanh %61 : vector<2x128xf32>
    %cst_27 = arith.constant 1.000000e+00 : f32
    %63 = vector.broadcast %cst_27 : f32 to vector<2x128xf32>
    %64 = arith.addf %62, %63 : vector<2x128xf32>
    %cst_28 = arith.constant 5.000000e-01 : f32
    %65 = vector.broadcast %cst_28 : f32 to vector<2x128xf32>
    %66 = arith.mulf %65, %64 : vector<2x128xf32>
    %67 = vector.extract_strided_slice %50 {offsets = [0, 256], sizes = [2, 128], strides = [1, 1]} : vector<2x512xf32> to vector<2x128xf32>
    %68 = math.tanh %67 : vector<2x128xf32>
    %69 = vector.extract_strided_slice %50 {offsets = [0, 384], sizes = [2, 128], strides = [1, 1]} : vector<2x512xf32> to vector<2x128xf32>
    %cst_29 = arith.constant 5.000000e-01 : f32
    %70 = vector.broadcast %cst_29 : f32 to vector<2x128xf32>
    %71 = arith.mulf %70, %69 : vector<2x128xf32>
    %72 = math.tanh %71 : vector<2x128xf32>
    %cst_30 = arith.constant 1.000000e+00 : f32
    %73 = vector.broadcast %cst_30 : f32 to vector<2x128xf32>
    %74 = arith.addf %72, %73 : vector<2x128xf32>
    %cst_31 = arith.constant 5.000000e-01 : f32
    %75 = vector.broadcast %cst_31 : f32 to vector<2x128xf32>
    %76 = arith.mulf %75, %74 : vector<2x128xf32>
    %77 = arith.mulf %66, %39 : vector<2x128xf32>
    %78 = arith.mulf %58, %68 : vector<2x128xf32>
    %79 = arith.addf %77, %78 : vector<2x128xf32>
    %80 = math.tanh %79 : vector<2x128xf32>
    %81 = arith.mulf %76, %80 : vector<2x128xf32>
    %82 = arith.index_cast %c1_i32 : i32 to index
    %c0_32 = arith.constant 0 : index
    %c0_33 = arith.constant 0 : index
    %83 = vector.load %arg6[%82, %c0_32, %c0_33] : memref<8x2x128xf32, #tpu.memory_space<vmem>>, vector<1x2x128xf32>
    %84 = vector.shape_cast %83 : vector<1x2x128xf32> to vector<2x128xf32>
    %85 = vector.shape_cast %81 : vector<2x128xf32> to vector<1x2x128xf32>
    tpu.vector_store %arg6[%82, %c0_32, %c0_33], %85 {strides = array<i32>} : memref<8x2x128xf32, #tpu.memory_space<vmem>>, vector<1x2x128xf32>,
    %c2_i32 = arith.constant 2 : i32
    %86 = arith.index_cast %c2_i32 : i32 to index
    %c0_34 = arith.constant 0 : index
    %c0_35 = arith.constant 0 : index
    %87 = vector.load %arg2[%86, %c0_34, %c0_35] : memref<8x2x512xf32, #tpu.memory_space<vmem>>, vector<1x2x512xf32>
    %88 = vector.shape_cast %87 : vector<1x2x512xf32> to vector<2x512xf32>
    %cst_36 = arith.constant dense<0.000000e+00> : vector<2x512xf32>
    %89 = tpu.matmul %81, %3, %cst_36 {dimension_numbers = #tpu.dot_dimension_numbers<[1], [0], [0], [1], [0, 0, 1, 1], [], []>} : vector<2x128xf32>, vector<128x512xf32>, vector<2x512xf32> -> vector<2x512xf32>
    %90 = arith.addf %88, %89 : vector<2x512xf32>
    %91 = vector.extract_strided_slice %90 {offsets = [0, 0], sizes = [2, 128], strides = [1, 1]} : vector<2x512xf32> to vector<2x128xf32>
    %cst_37 = arith.constant 5.000000e-01 : f32
    %92 = vector.broadcast %cst_37 : f32 to vector<2x128xf32>
    %93 = arith.mulf %92, %91 : vector<2x128xf32>
    %94 = math.tanh %93 : vector<2x128xf32>
    %cst_38 = arith.constant 1.000000e+00 : f32
    %95 = vector.broadcast %cst_38 : f32 to vector<2x128xf32>
    %96 = arith.addf %94, %95 : vector<2x128xf32>
    %cst_39 = arith.constant 5.000000e-01 : f32
    %97 = vector.broadcast %cst_39 : f32 to vector<2x128xf32>
    %98 = arith.mulf %97, %96 : vector<2x128xf32>
    %99 = vector.extract_strided_slice %90 {offsets = [0, 128], sizes = [2, 128], strides = [1, 1]} : vector<2x512xf32> to vector<2x128xf32>
    %cst_40 = arith.constant 5.000000e-01 : f32
    %100 = vector.broadcast %cst_40 : f32 to vector<2x128xf32>
    %101 = arith.mulf %100, %99 : vector<2x128xf32>
    %102 = math.tanh %101 : vector<2x128xf32>
    %cst_41 = arith.constant 1.000000e+00 : f32
    %103 = vector.broadcast %cst_41 : f32 to vector<2x128xf32>
    %104 = arith.addf %102, %103 : vector<2x128xf32>
    %cst_42 = arith.constant 5.000000e-01 : f32
    %105 = vector.broadcast %cst_42 : f32 to vector<2x128xf32>
    %106 = arith.mulf %105, %104 : vector<2x128xf32>
    %107 = vector.extract_strided_slice %90 {offsets = [0, 256], sizes = [2, 128], strides = [1, 1]} : vector<2x512xf32> to vector<2x128xf32>
    %108 = math.tanh %107 : vector<2x128xf32>
    %109 = vector.extract_strided_slice %90 {offsets = [0, 384], sizes = [2, 128], strides = [1, 1]} : vector<2x512xf32> to vector<2x128xf32>
    %cst_43 = arith.constant 5.000000e-01 : f32
    %110 = vector.broadcast %cst_43 : f32 to vector<2x128xf32>
    %111 = arith.mulf %110, %109 : vector<2x128xf32>
    %112 = math.tanh %111 : vector<2x128xf32>
    %cst_44 = arith.constant 1.000000e+00 : f32
    %113 = vector.broadcast %cst_44 : f32 to vector<2x128xf32>
    %114 = arith.addf %112, %113 : vector<2x128xf32>
    %cst_45 = arith.constant 5.000000e-01 : f32
    %115 = vector.broadcast %cst_45 : f32 to vector<2x128xf32>
    %116 = arith.mulf %115, %114 : vector<2x128xf32>
    %117 = arith.mulf %106, %79 : vector<2x128xf32>
    %118 = arith.mulf %98, %108 : vector<2x128xf32>
    %119 = arith.addf %117, %118 : vector<2x128xf32>
    %120 = math.tanh %119 : vector<2x128xf32>
    %121 = arith.mulf %116, %120 : vector<2x128xf32>
    %122 = arith.index_cast %c2_i32 : i32 to index
    %c0_46 = arith.constant 0 : index
    %c0_47 = arith.constant 0 : index
    %123 = vector.load %arg6[%122, %c0_46, %c0_47] : memref<8x2x128xf32, #tpu.memory_space<vmem>>, vector<1x2x128xf32>
    %124 = vector.shape_cast %123 : vector<1x2x128xf32> to vector<2x128xf32>
    %125 = vector.shape_cast %121 : vector<2x128xf32> to vector<1x2x128xf32>
    tpu.vector_store %arg6[%122, %c0_46, %c0_47], %125 {strides = array<i32>} : memref<8x2x128xf32, #tpu.memory_space<vmem>>, vector<1x2x128xf32>,
    %c3_i32 = arith.constant 3 : i32
    %126 = arith.index_cast %c3_i32 : i32 to index
    %c0_48 = arith.constant 0 : index
    %c0_49 = arith.constant 0 : index
    %127 = vector.load %arg2[%126, %c0_48, %c0_49] : memref<8x2x512xf32, #tpu.memory_space<vmem>>, vector<1x2x512xf32>
    %128 = vector.shape_cast %127 : vector<1x2x512xf32> to vector<2x512xf32>
    %cst_50 = arith.constant dense<0.000000e+00> : vector<2x512xf32>
    %129 = tpu.matmul %121, %3, %cst_50 {dimension_numbers = #tpu.dot_dimension_numbers<[1], [0], [0], [1], [0, 0, 1, 1], [], []>} : vector<2x128xf32>, vector<128x512xf32>, vector<2x512xf32> -> vector<2x512xf32>
    %130 = arith.addf %128, %129 : vector<2x512xf32>
    %131 = vector.extract_strided_slice %130 {offsets = [0, 0], sizes = [2, 128], strides = [1, 1]} : vector<2x512xf32> to vector<2x128xf32>
    %cst_51 = arith.constant 5.000000e-01 : f32
    %132 = vector.broadcast %cst_51 : f32 to vector<2x128xf32>
    %133 = arith.mulf %132, %131 : vector<2x128xf32>
    %134 = math.tanh %133 : vector<2x128xf32>
    %cst_52 = arith.constant 1.000000e+00 : f32
    %135 = vector.broadcast %cst_52 : f32 to vector<2x128xf32>
    %136 = arith.addf %134, %135 : vector<2x128xf32>
    %cst_53 = arith.constant 5.000000e-01 : f32
    %137 = vector.broadcast %cst_53 : f32 to vector<2x128xf32>
    %138 = arith.mulf %137, %136 : vector<2x128xf32>
    %139 = vector.extract_strided_slice %130 {offsets = [0, 128], sizes = [2, 128], strides = [1, 1]} : vector<2x512xf32> to vector<2x128xf32>
    %cst_54 = arith.constant 5.000000e-01 : f32
    %140 = vector.broadcast %cst_54 : f32 to vector<2x128xf32>
    %141 = arith.mulf %140, %139 : vector<2x128xf32>
    %142 = math.tanh %141 : vector<2x128xf32>
    %cst_55 = arith.constant 1.000000e+00 : f32
    %143 = vector.broadcast %cst_55 : f32 to vector<2x128xf32>
    %144 = arith.addf %142, %143 : vector<2x128xf32>
    %cst_56 = arith.constant 5.000000e-01 : f32
    %145 = vector.broadcast %cst_56 : f32 to vector<2x128xf32>
    %146 = arith.mulf %145, %144 : vector<2x128xf32>
    %147 = vector.extract_strided_slice %130 {offsets = [0, 256], sizes = [2, 128], strides = [1, 1]} : vector<2x512xf32> to vector<2x128xf32>
    %148 = math.tanh %147 : vector<2x128xf32>
    %149 = vector.extract_strided_slice %130 {offsets = [0, 384], sizes = [2, 128], strides = [1, 1]} : vector<2x512xf32> to vector<2x128xf32>
    %cst_57 = arith.constant 5.000000e-01 : f32
    %150 = vector.broadcast %cst_57 : f32 to vector<2x128xf32>
    %151 = arith.mulf %150, %149 : vector<2x128xf32>
    %152 = math.tanh %151 : vector<2x128xf32>
    %cst_58 = arith.constant 1.000000e+00 : f32
    %153 = vector.broadcast %cst_58 : f32 to vector<2x128xf32>
    %154 = arith.addf %152, %153 : vector<2x128xf32>
    %cst_59 = arith.constant 5.000000e-01 : f32
    %155 = vector.broadcast %cst_59 : f32 to vector<2x128xf32>
    %156 = arith.mulf %155, %154 : vector<2x128xf32>
    %157 = arith.mulf %146, %119 : vector<2x128xf32>
    %158 = arith.mulf %138, %148 : vector<2x128xf32>
    %159 = arith.addf %157, %158 : vector<2x128xf32>
    %160 = math.tanh %159 : vector<2x128xf32>
    %161 = arith.mulf %156, %160 : vector<2x128xf32>
    %162 = arith.index_cast %c3_i32 : i32 to index
    %c0_60 = arith.constant 0 : index
    %c0_61 = arith.constant 0 : index
    %163 = vector.load %arg6[%162, %c0_60, %c0_61] : memref<8x2x128xf32, #tpu.memory_space<vmem>>, vector<1x2x128xf32>
    %164 = vector.shape_cast %163 : vector<1x2x128xf32> to vector<2x128xf32>
    %165 = vector.shape_cast %161 : vector<2x128xf32> to vector<1x2x128xf32>
    tpu.vector_store %arg6[%162, %c0_60, %c0_61], %165 {strides = array<i32>} : memref<8x2x128xf32, #tpu.memory_space<vmem>>, vector<1x2x128xf32>,
    %c4_i32 = arith.constant 4 : i32
    %166 = arith.index_cast %c4_i32 : i32 to index
    %c0_62 = arith.constant 0 : index
    %c0_63 = arith.constant 0 : index
    %167 = vector.load %arg2[%166, %c0_62, %c0_63] : memref<8x2x512xf32, #tpu.memory_space<vmem>>, vector<1x2x512xf32>
    %168 = vector.shape_cast %167 : vector<1x2x512xf32> to vector<2x512xf32>
    %cst_64 = arith.constant dense<0.000000e+00> : vector<2x512xf32>
    %169 = tpu.matmul %161, %3, %cst_64 {dimension_numbers = #tpu.dot_dimension_numbers<[1], [0], [0], [1], [0, 0, 1, 1], [], []>} : vector<2x128xf32>, vector<128x512xf32>, vector<2x512xf32> -> vector<2x512xf32>
    %170 = arith.addf %168, %169 : vector<2x512xf32>
    %171 = vector.extract_strided_slice %170 {offsets = [0, 0], sizes = [2, 128], strides = [1, 1]} : vector<2x512xf32> to vector<2x128xf32>
    %cst_65 = arith.constant 5.000000e-01 : f32
    %172 = vector.broadcast %cst_65 : f32 to vector<2x128xf32>
    %173 = arith.mulf %172, %171 : vector<2x128xf32>
    %174 = math.tanh %173 : vector<2x128xf32>
    %cst_66 = arith.constant 1.000000e+00 : f32
    %175 = vector.broadcast %cst_66 : f32 to vector<2x128xf32>
    %176 = arith.addf %174, %175 : vector<2x128xf32>
    %cst_67 = arith.constant 5.000000e-01 : f32
    %177 = vector.broadcast %cst_67 : f32 to vector<2x128xf32>
    %178 = arith.mulf %177, %176 : vector<2x128xf32>
    %179 = vector.extract_strided_slice %170 {offsets = [0, 128], sizes = [2, 128], strides = [1, 1]} : vector<2x512xf32> to vector<2x128xf32>
    %cst_68 = arith.constant 5.000000e-01 : f32
    %180 = vector.broadcast %cst_68 : f32 to vector<2x128xf32>
    %181 = arith.mulf %180, %179 : vector<2x128xf32>
    %182 = math.tanh %181 : vector<2x128xf32>
    %cst_69 = arith.constant 1.000000e+00 : f32
    %183 = vector.broadcast %cst_69 : f32 to vector<2x128xf32>
    %184 = arith.addf %182, %183 : vector<2x128xf32>
    %cst_70 = arith.constant 5.000000e-01 : f32
    %185 = vector.broadcast %cst_70 : f32 to vector<2x128xf32>
    %186 = arith.mulf %185, %184 : vector<2x128xf32>
    %187 = vector.extract_strided_slice %170 {offsets = [0, 256], sizes = [2, 128], strides = [1, 1]} : vector<2x512xf32> to vector<2x128xf32>
    %188 = math.tanh %187 : vector<2x128xf32>
    %189 = vector.extract_strided_slice %170 {offsets = [0, 384], sizes = [2, 128], strides = [1, 1]} : vector<2x512xf32> to vector<2x128xf32>
    %cst_71 = arith.constant 5.000000e-01 : f32
    %190 = vector.broadcast %cst_71 : f32 to vector<2x128xf32>
    %191 = arith.mulf %190, %189 : vector<2x128xf32>
    %192 = math.tanh %191 : vector<2x128xf32>
    %cst_72 = arith.constant 1.000000e+00 : f32
    %193 = vector.broadcast %cst_72 : f32 to vector<2x128xf32>
    %194 = arith.addf %192, %193 : vector<2x128xf32>
    %cst_73 = arith.constant 5.000000e-01 : f32
    %195 = vector.broadcast %cst_73 : f32 to vector<2x128xf32>
    %196 = arith.mulf %195, %194 : vector<2x128xf32>
    %197 = arith.mulf %186, %159 : vector<2x128xf32>
    %198 = arith.mulf %178, %188 : vector<2x128xf32>
    %199 = arith.addf %197, %198 : vector<2x128xf32>
    %200 = math.tanh %199 : vector<2x128xf32>
    %201 = arith.mulf %196, %200 : vector<2x128xf32>
    %202 = arith.index_cast %c4_i32 : i32 to index
    %c0_74 = arith.constant 0 : index
    %c0_75 = arith.constant 0 : index
    %203 = vector.load %arg6[%202, %c0_74, %c0_75] : memref<8x2x128xf32, #tpu.memory_space<vmem>>, vector<1x2x128xf32>
    %204 = vector.shape_cast %203 : vector<1x2x128xf32> to vector<2x128xf32>
    %205 = vector.shape_cast %201 : vector<2x128xf32> to vector<1x2x128xf32>
    tpu.vector_store %arg6[%202, %c0_74, %c0_75], %205 {strides = array<i32>} : memref<8x2x128xf32, #tpu.memory_space<vmem>>, vector<1x2x128xf32>,
    %c5_i32 = arith.constant 5 : i32
    %206 = arith.index_cast %c5_i32 : i32 to index
    %c0_76 = arith.constant 0 : index
    %c0_77 = arith.constant 0 : index
    %207 = vector.load %arg2[%206, %c0_76, %c0_77] : memref<8x2x512xf32, #tpu.memory_space<vmem>>, vector<1x2x512xf32>
    %208 = vector.shape_cast %207 : vector<1x2x512xf32> to vector<2x512xf32>
    %cst_78 = arith.constant dense<0.000000e+00> : vector<2x512xf32>
    %209 = tpu.matmul %201, %3, %cst_78 {dimension_numbers = #tpu.dot_dimension_numbers<[1], [0], [0], [1], [0, 0, 1, 1], [], []>} : vector<2x128xf32>, vector<128x512xf32>, vector<2x512xf32> -> vector<2x512xf32>
    %210 = arith.addf %208, %209 : vector<2x512xf32>
    %211 = vector.extract_strided_slice %210 {offsets = [0, 0], sizes = [2, 128], strides = [1, 1]} : vector<2x512xf32> to vector<2x128xf32>
    %cst_79 = arith.constant 5.000000e-01 : f32
    %212 = vector.broadcast %cst_79 : f32 to vector<2x128xf32>
    %213 = arith.mulf %212, %211 : vector<2x128xf32>
    %214 = math.tanh %213 : vector<2x128xf32>
    %cst_80 = arith.constant 1.000000e+00 : f32
    %215 = vector.broadcast %cst_80 : f32 to vector<2x128xf32>
    %216 = arith.addf %214, %215 : vector<2x128xf32>
    %cst_81 = arith.constant 5.000000e-01 : f32
    %217 = vector.broadcast %cst_81 : f32 to vector<2x128xf32>
    %218 = arith.mulf %217, %216 : vector<2x128xf32>
    %219 = vector.extract_strided_slice %210 {offsets = [0, 128], sizes = [2, 128], strides = [1, 1]} : vector<2x512xf32> to vector<2x128xf32>
    %cst_82 = arith.constant 5.000000e-01 : f32
    %220 = vector.broadcast %cst_82 : f32 to vector<2x128xf32>
    %221 = arith.mulf %220, %219 : vector<2x128xf32>
    %222 = math.tanh %221 : vector<2x128xf32>
    %cst_83 = arith.constant 1.000000e+00 : f32
    %223 = vector.broadcast %cst_83 : f32 to vector<2x128xf32>
    %224 = arith.addf %222, %223 : vector<2x128xf32>
    %cst_84 = arith.constant 5.000000e-01 : f32
    %225 = vector.broadcast %cst_84 : f32 to vector<2x128xf32>
    %226 = arith.mulf %225, %224 : vector<2x128xf32>
    %227 = vector.extract_strided_slice %210 {offsets = [0, 256], sizes = [2, 128], strides = [1, 1]} : vector<2x512xf32> to vector<2x128xf32>
    %228 = math.tanh %227 : vector<2x128xf32>
    %229 = vector.extract_strided_slice %210 {offsets = [0, 384], sizes = [2, 128], strides = [1, 1]} : vector<2x512xf32> to vector<2x128xf32>
    %cst_85 = arith.constant 5.000000e-01 : f32
    %230 = vector.broadcast %cst_85 : f32 to vector<2x128xf32>
    %231 = arith.mulf %230, %229 : vector<2x128xf32>
    %232 = math.tanh %231 : vector<2x128xf32>
    %cst_86 = arith.constant 1.000000e+00 : f32
    %233 = vector.broadcast %cst_86 : f32 to vector<2x128xf32>
    %234 = arith.addf %232, %233 : vector<2x128xf32>
    %cst_87 = arith.constant 5.000000e-01 : f32
    %235 = vector.broadcast %cst_87 : f32 to vector<2x128xf32>
    %236 = arith.mulf %235, %234 : vector<2x128xf32>
    %237 = arith.mulf %226, %199 : vector<2x128xf32>
    %238 = arith.mulf %218, %228 : vector<2x128xf32>
    %239 = arith.addf %237, %238 : vector<2x128xf32>
    %240 = math.tanh %239 : vector<2x128xf32>
    %241 = arith.mulf %236, %240 : vector<2x128xf32>
    %242 = arith.index_cast %c5_i32 : i32 to index
    %c0_88 = arith.constant 0 : index
    %c0_89 = arith.constant 0 : index
    %243 = vector.load %arg6[%242, %c0_88, %c0_89] : memref<8x2x128xf32, #tpu.memory_space<vmem>>, vector<1x2x128xf32>
    %244 = vector.shape_cast %243 : vector<1x2x128xf32> to vector<2x128xf32>
    %245 = vector.shape_cast %241 : vector<2x128xf32> to vector<1x2x128xf32>
    tpu.vector_store %arg6[%242, %c0_88, %c0_89], %245 {strides = array<i32>} : memref<8x2x128xf32, #tpu.memory_space<vmem>>, vector<1x2x128xf32>,
    %c6_i32 = arith.constant 6 : i32
    %246 = arith.index_cast %c6_i32 : i32 to index
    %c0_90 = arith.constant 0 : index
    %c0_91 = arith.constant 0 : index
    %247 = vector.load %arg2[%246, %c0_90, %c0_91] : memref<8x2x512xf32, #tpu.memory_space<vmem>>, vector<1x2x512xf32>
    %248 = vector.shape_cast %247 : vector<1x2x512xf32> to vector<2x512xf32>
    %cst_92 = arith.constant dense<0.000000e+00> : vector<2x512xf32>
    %249 = tpu.matmul %241, %3, %cst_92 {dimension_numbers = #tpu.dot_dimension_numbers<[1], [0], [0], [1], [0, 0, 1, 1], [], []>} : vector<2x128xf32>, vector<128x512xf32>, vector<2x512xf32> -> vector<2x512xf32>
    %250 = arith.addf %248, %249 : vector<2x512xf32>
    %251 = vector.extract_strided_slice %250 {offsets = [0, 0], sizes = [2, 128], strides = [1, 1]} : vector<2x512xf32> to vector<2x128xf32>
    %cst_93 = arith.constant 5.000000e-01 : f32
    %252 = vector.broadcast %cst_93 : f32 to vector<2x128xf32>
    %253 = arith.mulf %252, %251 : vector<2x128xf32>
    %254 = math.tanh %253 : vector<2x128xf32>
    %cst_94 = arith.constant 1.000000e+00 : f32
    %255 = vector.broadcast %cst_94 : f32 to vector<2x128xf32>
    %256 = arith.addf %254, %255 : vector<2x128xf32>
    %cst_95 = arith.constant 5.000000e-01 : f32
    %257 = vector.broadcast %cst_95 : f32 to vector<2x128xf32>
    %258 = arith.mulf %257, %256 : vector<2x128xf32>
    %259 = vector.extract_strided_slice %250 {offsets = [0, 128], sizes = [2, 128], strides = [1, 1]} : vector<2x512xf32> to vector<2x128xf32>
    %cst_96 = arith.constant 5.000000e-01 : f32
    %260 = vector.broadcast %cst_96 : f32 to vector<2x128xf32>
    %261 = arith.mulf %260, %259 : vector<2x128xf32>
    %262 = math.tanh %261 : vector<2x128xf32>
    %cst_97 = arith.constant 1.000000e+00 : f32
    %263 = vector.broadcast %cst_97 : f32 to vector<2x128xf32>
    %264 = arith.addf %262, %263 : vector<2x128xf32>
    %cst_98 = arith.constant 5.000000e-01 : f32
    %265 = vector.broadcast %cst_98 : f32 to vector<2x128xf32>
    %266 = arith.mulf %265, %264 : vector<2x128xf32>
    %267 = vector.extract_strided_slice %250 {offsets = [0, 256], sizes = [2, 128], strides = [1, 1]} : vector<2x512xf32> to vector<2x128xf32>
    %268 = math.tanh %267 : vector<2x128xf32>
    %269 = vector.extract_strided_slice %250 {offsets = [0, 384], sizes = [2, 128], strides = [1, 1]} : vector<2x512xf32> to vector<2x128xf32>
    %cst_99 = arith.constant 5.000000e-01 : f32
    %270 = vector.broadcast %cst_99 : f32 to vector<2x128xf32>
    %271 = arith.mulf %270, %269 : vector<2x128xf32>
    %272 = math.tanh %271 : vector<2x128xf32>
    %cst_100 = arith.constant 1.000000e+00 : f32
    %273 = vector.broadcast %cst_100 : f32 to vector<2x128xf32>
    %274 = arith.addf %272, %273 : vector<2x128xf32>
    %cst_101 = arith.constant 5.000000e-01 : f32
    %275 = vector.broadcast %cst_101 : f32 to vector<2x128xf32>
    %276 = arith.mulf %275, %274 : vector<2x128xf32>
    %277 = arith.mulf %266, %239 : vector<2x128xf32>
    %278 = arith.mulf %258, %268 : vector<2x128xf32>
    %279 = arith.addf %277, %278 : vector<2x128xf32>
    %280 = math.tanh %279 : vector<2x128xf32>
    %281 = arith.mulf %276, %280 : vector<2x128xf32>
    %282 = arith.index_cast %c6_i32 : i32 to index
    %c0_102 = arith.constant 0 : index
    %c0_103 = arith.constant 0 : index
    %283 = vector.load %arg6[%282, %c0_102, %c0_103] : memref<8x2x128xf32, #tpu.memory_space<vmem>>, vector<1x2x128xf32>
    %284 = vector.shape_cast %283 : vector<1x2x128xf32> to vector<2x128xf32>
    %285 = vector.shape_cast %281 : vector<2x128xf32> to vector<1x2x128xf32>
    tpu.vector_store %arg6[%282, %c0_102, %c0_103], %285 {strides = array<i32>} : memref<8x2x128xf32, #tpu.memory_space<vmem>>, vector<1x2x128xf32>,
    %c7_i32 = arith.constant 7 : i32
    %286 = arith.index_cast %c7_i32 : i32 to index
    %c0_104 = arith.constant 0 : index
    %c0_105 = arith.constant 0 : index
    %287 = vector.load %arg2[%286, %c0_104, %c0_105] : memref<8x2x512xf32, #tpu.memory_space<vmem>>, vector<1x2x512xf32>
    %288 = vector.shape_cast %287 : vector<1x2x512xf32> to vector<2x512xf32>
    %cst_106 = arith.constant dense<0.000000e+00> : vector<2x512xf32>
    %289 = tpu.matmul %281, %3, %cst_106 {dimension_numbers = #tpu.dot_dimension_numbers<[1], [0], [0], [1], [0, 0, 1, 1], [], []>} : vector<2x128xf32>, vector<128x512xf32>, vector<2x512xf32> -> vector<2x512xf32>
    %290 = arith.addf %288, %289 : vector<2x512xf32>
    %291 = vector.extract_strided_slice %290 {offsets = [0, 0], sizes = [2, 128], strides = [1, 1]} : vector<2x512xf32> to vector<2x128xf32>
    %cst_107 = arith.constant 5.000000e-01 : f32
    %292 = vector.broadcast %cst_107 : f32 to vector<2x128xf32>
    %293 = arith.mulf %292, %291 : vector<2x128xf32>
    %294 = math.tanh %293 : vector<2x128xf32>
    %cst_108 = arith.constant 1.000000e+00 : f32
    %295 = vector.broadcast %cst_108 : f32 to vector<2x128xf32>
    %296 = arith.addf %294, %295 : vector<2x128xf32>
    %cst_109 = arith.constant 5.000000e-01 : f32
    %297 = vector.broadcast %cst_109 : f32 to vector<2x128xf32>
    %298 = arith.mulf %297, %296 : vector<2x128xf32>
    %299 = vector.extract_strided_slice %290 {offsets = [0, 128], sizes = [2, 128], strides = [1, 1]} : vector<2x512xf32> to vector<2x128xf32>
    %cst_110 = arith.constant 5.000000e-01 : f32
    %300 = vector.broadcast %cst_110 : f32 to vector<2x128xf32>
    %301 = arith.mulf %300, %299 : vector<2x128xf32>
    %302 = math.tanh %301 : vector<2x128xf32>
    %cst_111 = arith.constant 1.000000e+00 : f32
    %303 = vector.broadcast %cst_111 : f32 to vector<2x128xf32>
    %304 = arith.addf %302, %303 : vector<2x128xf32>
    %cst_112 = arith.constant 5.000000e-01 : f32
    %305 = vector.broadcast %cst_112 : f32 to vector<2x128xf32>
    %306 = arith.mulf %305, %304 : vector<2x128xf32>
    %307 = vector.extract_strided_slice %290 {offsets = [0, 256], sizes = [2, 128], strides = [1, 1]} : vector<2x512xf32> to vector<2x128xf32>
    %308 = math.tanh %307 : vector<2x128xf32>
    %309 = vector.extract_strided_slice %290 {offsets = [0, 384], sizes = [2, 128], strides = [1, 1]} : vector<2x512xf32> to vector<2x128xf32>
    %cst_113 = arith.constant 5.000000e-01 : f32
    %310 = vector.broadcast %cst_113 : f32 to vector<2x128xf32>
    %311 = arith.mulf %310, %309 : vector<2x128xf32>
    %312 = math.tanh %311 : vector<2x128xf32>
    %cst_114 = arith.constant 1.000000e+00 : f32
    %313 = vector.broadcast %cst_114 : f32 to vector<2x128xf32>
    %314 = arith.addf %312, %313 : vector<2x128xf32>
    %cst_115 = arith.constant 5.000000e-01 : f32
    %315 = vector.broadcast %cst_115 : f32 to vector<2x128xf32>
    %316 = arith.mulf %315, %314 : vector<2x128xf32>
    %317 = arith.mulf %306, %279 : vector<2x128xf32>
    %318 = arith.mulf %298, %308 : vector<2x128xf32>
    %319 = arith.addf %317, %318 : vector<2x128xf32>
    %320 = math.tanh %319 : vector<2x128xf32>
    %321 = arith.mulf %316, %320 : vector<2x128xf32>
    %322 = arith.index_cast %c7_i32 : i32 to index
    %c0_116 = arith.constant 0 : index
    %c0_117 = arith.constant 0 : index
    %323 = vector.load %arg6[%322, %c0_116, %c0_117] : memref<8x2x128xf32, #tpu.memory_space<vmem>>, vector<1x2x128xf32>
    %324 = vector.shape_cast %323 : vector<1x2x128xf32> to vector<2x128xf32>
    %325 = vector.shape_cast %321 : vector<2x128xf32> to vector<1x2x128xf32>
    tpu.vector_store %arg6[%322, %c0_116, %c0_117], %325 {strides = array<i32>} : memref<8x2x128xf32, #tpu.memory_space<vmem>>, vector<1x2x128xf32>,
    %c8_i32 = arith.constant 8 : i32
    %c0_118 = arith.constant 0 : index
    %c0_119 = arith.constant 0 : index
    %326 = vector.load %arg7[%c0_118, %c0_119] : memref<2x128xf32, #tpu.memory_space<vmem>>, vector<2x128xf32>
    tpu.vector_store %arg7[%c0_118, %c0_119], %321 {strides = array<i32>} : memref<2x128xf32, #tpu.memory_space<vmem>>, vector<2x128xf32>,
    %c0_120 = arith.constant 0 : index
    %c0_121 = arith.constant 0 : index
    %327 = vector.load %arg8[%c0_120, %c0_121] : memref<2x128xf32, #tpu.memory_space<vmem>>, vector<2x128xf32>
    tpu.vector_store %arg8[%c0_120, %c0_121], %319 {strides = array<i32>} : memref<2x128xf32, #tpu.memory_space<vmem>>, vector<2x128xf32>,
    return
  }
  func.func @transform_0(%arg0: i32, %arg1: i32) -> (i32, i32, i32) {
    %c0_i32 = arith.constant 0 : i32
    %c0_i32_0 = arith.constant 0 : i32
    return %arg1, %arg0, %c0_i32 : i32, i32, i32
  }
  func.func @transform_1(%arg0: i32, %arg1: i32) -> (i32, i32) {
    %c0_i32 = arith.constant 0 : i32
    %c0_i32_0 = arith.constant 0 : i32
    %c0_i32_1 = arith.constant 0 : i32
    return %c0_i32, %c0_i32_0 : i32, i32
  }
  func.func @transform_2(%arg0: i32, %arg1: i32) -> (i32, i32) {
    %c0_i32 = arith.constant 0 : i32
    %c0_i32_0 = arith.constant 0 : i32
    return %arg0, %c0_i32 : i32, i32
  }
  func.func @transform_3(%arg0: i32, %arg1: i32) -> (i32, i32) {
    %c0_i32 = arith.constant 0 : i32
    %c0_i32_0 = arith.constant 0 : i32
    return %arg0, %c0_i32 : i32, i32
  }
  func.func @transform_4(%arg0: i32, %arg1: i32) -> (i32, i32, i32) {
    %c0_i32 = arith.constant 0 : i32
    %c0_i32_0 = arith.constant 0 : i32
    return %arg1, %arg0, %c0_i32 : i32, i32, i32
  }
  func.func @transform_5(%arg0: i32, %arg1: i32) -> (i32, i32) {
    %c0_i32 = arith.constant 0 : i32
    %c0_i32_0 = arith.constant 0 : i32
    return %arg0, %c0_i32 : i32, i32
  }
  func.func @transform_6(%arg0: i32, %arg1: i32) -> (i32, i32) {
    %c0_i32 = arith.constant 0 : i32
    %c0_i32_0 = arith.constant 0 : i32
    return %arg0, %c0_i32 : i32, i32
  }
}

</mosaic_0001>

<bundles_post_ra>
// kernel: tpu_custom_call.1
= control target key start
LH: loop header
LB: loop body
LE: loop exit
PB: predicated region body
PF: predicated region fallthrough
CT: control target
= control target key end

     0   :  { %12 = vsyncpa [#allocation3], 0  ;;  %s2951_s0 = inlined_call_operand.hbm [shape: f32[8,2,512], index: 0, kind: input, shape index: {}]   ;;  %s2952_s1 = inlined_call_operand.hbm [shape: f32[128,512], index: 1, kind: input, shape index: {}]   ;;  %s2953_s2 = inlined_call_operand.vmem [shape: f32[2,128], index: 2, kind: input, shape index: {}]   ;;  %s2954_s3 = inlined_call_operand.vmem [shape: f32[2,128], index: 3, kind: input, shape index: {}]   ;;  %s2955_s4 = inlined_call_operand.hbm [shape: f32[8,2,128], index: 4, kind: output, shape index: {0}]   ;;  %s2956_s5 = inlined_call_operand.hbm [shape: f32[2,128], index: 5, kind: output, shape index: {1}]   ;;  %s2957_s6 = inlined_call_operand.hbm [shape: f32[2,128], index: 6, kind: output, shape index: {2}]  }
   0x1   :  { %13 = vsyncpa [#allocation6], 0 }
   0x2   :  { %14 = vsyncpa [#allocation4], 0 }
   0x3   :  { %15 = vsyncpa [#allocation9], 0  ;;  %s2443_s21 = smov [#allocation2]   ;;  %s2325_s25 = scalar_lea.hbm %s2951_s0, 1024 }
   0x4   :  { %s21_s22 = sshll.u32 %s2443_s21, 4  ;;  %p2326_p0 = scmp.ne.s32.totalorder %s2951_s0, %s2325_s25  ;;  %s22_s22 = int_to_ptr.vmem [resolvable:$true] %s21_s22 }
   0x5   :  { %p2329_p1 = scmp.lt.u32.totalorder %s2325_s25, %s2951_s0 }
   0x7   :  { %p2331_p2 = pnand %p2329_p1, %p2326_p0 }
   0x9   :  { %2334 = shalt.err (!%p2331_p2)
}
   0xa   :  { %s2335_s30 = scalar_lea.vmem %s22_s22, 1024  ;;  %p2340_p4 = scmp.lt.s32.totalorder %s22_s22, %s22_s22 }
   0xb   :  { %p2336_p3 = scmp.ne.s32.totalorder %s22_s22, %s2335_s30  ;;  %p2341_p5 = scmp.lt.s32.totalorder %s2335_s30, %s2335_s30 }
   0xd   :  { %p2342_p6 = por %p2341_p5, %p2340_p4 }
   0xf   :  { %p2343_p7 = pnand %p2342_p6, %p2336_p3 }
  0x11   :  { %2346 = shalt.err (!%p2343_p7)
}
  0x12   :  { %s2444_s7 = smov 128   ;;  %s2445_s8 = smov 8  }
  0x13   :  { %27 = dma.hbm_to_vmem [thread:$0]  %s2951_s0, 1024, %s22_s22, [#allocation3], %s2444_s7, %s2444_s7, %s2445_s8  }
  0x14   :  { %s2446_s11 = smov [#allocation5]   ;;  %s2347_s15 = scalar_lea.hbm %s2952_s1, 8192 }
  0x15   :  { %s33_s12 = sshll.u32 %s2446_s11, 4  ;;  %p2348_p8 = scmp.ne.s32.totalorder %s2952_s1, %s2347_s15  ;;  %s34_s12 = int_to_ptr.vmem [resolvable:$true] %s33_s12 }
  0x16   :  { %p2351_p9 = scmp.lt.u32.totalorder %s2347_s15, %s2952_s1 }
  0x18   :  { %p2353_p10 = pnand %p2351_p9, %p2348_p8 }
  0x1a   :  { %2356 = shalt.err (!%p2353_p10)
}
  0x1b   :  { %s2357_s20 = scalar_lea.vmem %s34_s12, 8192  ;;  %p2362_p12 = scmp.lt.s32.totalorder %s34_s12, %s34_s12 }
  0x1c   :  { %p2358_p11 = scmp.ne.s32.totalorder %s34_s12, %s2357_s20  ;;  %p2363_p13 = scmp.lt.s32.totalorder %s2357_s20, %s2357_s20 }
  0x1e   :  { %p2364_p0 = por %p2363_p13, %p2362_p12 }
  0x20   :  { %p2365_p1 = pnand %p2364_p0, %p2358_p11 }
  0x22   :  { %2368 = shalt.err (!%p2365_p1)
}
  0x23   :  { %s2447_s0 = smov 512   ;;  %s2448_s21 = smov 32  }
  0x24   :  { %39 = dma.hbm_to_vmem [thread:$0]  %s2952_s1, 8192, %s34_s12, [#allocation6], %s2447_s0, %s2447_s0, %s2448_s21  }
  0x25   :  { %2435 = dma.done.wait [#allocation3], 1024  }
  0x26   :  { %2436 = vsyncadd [#allocation3], 4294966272 }
  0x27   :  { %2437 = dma.done.wait [#allocation6], 8192  }
  0x28   :  { %2438 = vsyncadd [#allocation6], 4294959104  ;;  %v2449_v0 = vmov 0.0   ;;  %v59_v1 = vld [vmem:[#allocation5 + $0x8] sm:$0xff]  ;;  %v61_v3 = vld [vmem:[#allocation5 + $0x18] sm:$0xff]  ;;  %s2452_s27 = smov [#allocation7]  }
  0x29   :  { %189 = vmatprep.mubr.f32.mxu0 %v2449_v0  ;;  %260 = vmatprep.mubr.f32.mxu1 %v2449_v0  ;;  %v63_v2 = vld [vmem:[#allocation5 + $0x28] sm:$0xff]  ;;  %v65_v5 = vld [vmem:[#allocation5 + $0x38] sm:$0xff]  ;;  %v58_v6 = vld [vmem:[#allocation5] sm:$0xff]  ;;  %s1681_s28 = sshll.u32 %s2452_s27, 4  ;;  %s2453_s29 = smov [#allocation10]   ;;  %s2899_s28 = int_to_ptr.vmem [resolvable:$true] %s1681_s28 }
  0x2a   :  { %v2517_v4 = vpack.c.bf16 %v63_v2, %v59_v1  ;;  %v62_v7 = vld [vmem:[#allocation5 + $0x20] sm:$0xff]  ;;  %v2519_v8 = vpack.c.bf16 %v65_v5, %v61_v3  ;;  %v60_v10 = vld [vmem:[#allocation5 + $0x10] sm:$0xff]  ;;  %v67_v12 = vld [vmem:[#allocation5 + $0x48] sm:$0xff]  ;;  %s1704_s30 = sshll.u32 %s2453_s29, 4  ;;  %s2901_s30 = int_to_ptr.vmem [resolvable:$true] %s1704_s30 }
  0x2b   :  { %v2521_v9 = vpack.c.bf16 %v62_v7, %v58_v6  ;;  %v64_v11 = vld [vmem:[#allocation5 + $0x30] sm:$0xff]  ;;  %v71_v14 = vld [vmem:[#allocation5 + $0x68] sm:$0xff]  ;;  %v69_v15 = vld [vmem:[#allocation5 + $0x58] sm:$0xff] }
  0x2c   :  { %1722 = vmatprep.subr.bf16.mxu0 %v2517_v4  ;;  %v2524_v13 = vpack.c.bf16 %v64_v11, %v60_v10  ;;  %v73_v16 = vld [vmem:[#allocation5 + $0x78] sm:$0xff]  ;;  %1754 = vmatprep.subr.bf16.mxu1 %v2519_v8  ;;  %v2528_v17 = vpack.c.bf16 %v71_v14, %v67_v12  ;;  %v66_v19 = vld [vmem:[#allocation5 + $0x40] sm:$0xff]  ;;  %v68_v21 = vld [vmem:[#allocation5 + $0x50] sm:$0xff] }
  0x2d   :  { %1724 = vmatpush1.bf16.msra.mxu0 %v2521_v9  ;;  %v2530_v18 = vpack.c.bf16 %v73_v16, %v69_v15  ;;  %v70_v20 = vld [vmem:[#allocation5 + $0x60] sm:$0xff]  ;;  %v72_v23 = vld [vmem:[#allocation5 + $0x70] sm:$0xff]  ;;  %v75_v24 = vld [vmem:[#allocation5 + $0x88] sm:$0xff] }
  0x2e   :  { %1756 = vmatpush1.bf16.msra.mxu1 %v2524_v13  ;;  %v2533_v22 = vpack.c.bf16 %v70_v20, %v66_v19  ;;  %v79_v25 = vld [vmem:[#allocation5 + $0xa8] sm:$0xff]  ;;  %1726 = vmatprep.subr.bf16.mxu0 %v2528_v17  ;;  %v2537_v26 = vpack.c.bf16 %v72_v23, %v68_v21  ;;  %v77_v28 = vld [vmem:[#allocation5 + $0x98] sm:$0xff]  ;;  %v74_v30 = vld [vmem:[#allocation5 + $0x80] sm:$0xff] }
  0x2f   :  { %1758 = vmatprep.subr.bf16.mxu1 %v2530_v18  ;;  %v2539_v27 = vpack.c.bf16 %v79_v25, %v75_v24  ;;  %v81_v29 = vld [vmem:[#allocation5 + $0xb8] sm:$0xff]  ;;  %v78_v32 = vld [vmem:[#allocation5 + $0xa0] sm:$0xff]  ;;  %v76_v33 = vld [vmem:[#allocation5 + $0x90] sm:$0xff] }
  0x30   :  { %v2541_v31 = vpack.c.bf16 %v81_v29, %v77_v28  ;;  %v80_v34 = vld [vmem:[#allocation5 + $0xb0] sm:$0xff]  ;;  %v2544_v35 = vpack.c.bf16 %v78_v32, %v74_v30  ;;  %v83_v36 = vld [vmem:[#allocation5 + $0xc8] sm:$0xff]  ;;  %v85_v38 = vld [vmem:[#allocation5 + $0xd8] sm:$0xff] }
  0x31   :  { %1728 = vmatpush1.bf16.msra.mxu0 %v2533_v22  ;;  %v87_v37 = vld [vmem:[#allocation5 + $0xe8] sm:$0xff]  ;;  %v2548_v39 = vpack.c.bf16 %v80_v34, %v76_v33  ;;  %v89_v41 = vld [vmem:[#allocation5 + $0xf8] sm:$0xff]  ;;  %v82_v42 = vld [vmem:[#allocation5 + $0xc0] sm:$0xff] }
  0x32   :  { %1760 = vmatpush1.bf16.msra.mxu1 %v2537_v26  ;;  %1730 = vmatprep.subr.bf16.mxu0 %v2539_v27  ;;  %v2550_v40 = vpack.c.bf16 %v87_v37, %v83_v36  ;;  %v86_v43 = vld [vmem:[#allocation5 + $0xe0] sm:$0xff]  ;;  %v2553_v44 = vpack.c.bf16 %v89_v41, %v85_v38  ;;  %v84_v45 = vld [vmem:[#allocation5 + $0xd0] sm:$0xff]  ;;  %v91_v47 = vld [vmem:[#allocation5 + $0x108] sm:$0xff] }
  0x33   :  { %1762 = vmatprep.subr.bf16.mxu1 %v2541_v31  ;;  %v88_v46 = vld [vmem:[#allocation5 + $0xf0] sm:$0xff]  ;;  %v95_v48 = vld [vmem:[#allocation5 + $0x128] sm:$0xff]  ;;  %v93_v49 = vld [vmem:[#allocation5 + $0x118] sm:$0xff]  ;;  %v2556_v51 = vpack.c.bf16 %v86_v43, %v82_v42 }
  0x34   :  { %v97_v50 = vld [vmem:[#allocation5 + $0x138] sm:$0xff]  ;;  %v2560_v52 = vpack.c.bf16 %v88_v46, %v84_v45  ;;  %v2562_v53 = vpack.c.bf16 %v95_v48, %v91_v47  ;;  %v90_v54 = vld [vmem:[#allocation5 + $0x100] sm:$0xff]  ;;  %v92_v56 = vld [vmem:[#allocation5 + $0x110] sm:$0xff] }
  0x35   :  { %1732 = vmatpush1.bf16.msra.mxu0 %v2544_v35  ;;  %v94_v55 = vld [vmem:[#allocation5 + $0x120] sm:$0xff]  ;;  %v2565_v57 = vpack.c.bf16 %v97_v50, %v93_v49  ;;  %v96_v58 = vld [vmem:[#allocation5 + $0x130] sm:$0xff]  ;;  %v99_v59 = vld [vmem:[#allocation5 + $0x148] sm:$0xff] }
  0x36   :  { %1764 = vmatpush1.bf16.msra.mxu1 %v2548_v39  ;;  %1734 = vmatprep.subr.bf16.mxu0 %v2550_v40  ;;  %v103_v60 = vld [vmem:[#allocation5 + $0x168] sm:$0xff]  ;;  %v101_v61 = vld [vmem:[#allocation5 + $0x158] sm:$0xff]  ;;  %v2568_v63 = vpack.c.bf16 %v94_v55, %v90_v54  ;;  %v2572_v1 = vpack.c.bf16 %v96_v58, %v92_v56  ;;  %v98_v3 = vld [vmem:[#allocation5 + $0x140] sm:$0xff]  ;;  %v2450_v54 = vmov 1983009808   ;;  %v276_v56 = vlaneseq }
  0x37   :  { %1766 = vmatprep.subr.bf16.mxu1 %v2553_v44  ;;  %v105_v62 = vld [vmem:[#allocation5 + $0x178] sm:$0xff]  ;;  %v2574_v2 = vpack.c.bf16 %v103_v60, %v99_v59  ;;  %v102_v5 = vld [vmem:[#allocation5 + $0x160] sm:$0xff]  ;;  %v100_v6 = vld [vmem:[#allocation5 + $0x150] sm:$0xff]  ;;  %v274_v55 = vunpack.c.l.s4 %v2450_v54 }
  0x38   :  { %v2577_v7 = vpack.c.bf16 %v105_v62, %v101_v61  ;;  %v104_v10 = vld [vmem:[#allocation5 + $0x170] sm:$0xff]  ;;  %v107_v11 = vld [vmem:[#allocation5 + $0x188] sm:$0xff]  ;;  %v109_v14 = vld [vmem:[#allocation5 + $0x198] sm:$0xff]  ;;  %v2580_v16 = vpack.c.bf16 %v102_v5, %v98_v3  ;;  %v277_v59 = vshrl.u32 %v276_v56, 7 }
  0x39   :  { %1736 = vmatpush1.bf16.msra.mxu0 %v2556_v51  ;;  %v111_v12 = vld [vmem:[#allocation5 + $0x1a8] sm:$0xff]  ;;  %v113_v15 = vld [vmem:[#allocation5 + $0x1b8] sm:$0xff]  ;;  %v106_v19 = vld [vmem:[#allocation5 + $0x180] sm:$0xff]  ;;  %v2584_v20 = vpack.c.bf16 %v104_v10, %v100_v6  ;;  %v275_v58 = vunpack.c.0.s8 %v274_v55 }
  0x3a   :  { %1768 = vmatpush1.bf16.msra.mxu1 %v2560_v52  ;;  %1738 = vmatprep.subr.bf16.mxu0 %v2562_v53  ;;  %v2586_v21 = vpack.c.bf16 %v111_v12, %v107_v11  ;;  %v110_v23 = vld [vmem:[#allocation5 + $0x1a0] sm:$0xff]  ;;  %v108_v24 = vld [vmem:[#allocation5 + $0x190] sm:$0xff]  ;;  %v2592_v28 = vpack.c.bf16 %v113_v15, %v109_v14  ;;  %v115_v30 = vld [vmem:[#allocation5 + $0x1c8] sm:$0xff] }
  0x3b   :  { %1770 = vmatprep.subr.bf16.mxu1 %v2565_v57  ;;  %v54_v25 = vld [vmem:[%s2953_s2] sm:$0x3]  ;;  %v112_v29 = vld [vmem:[#allocation5 + $0x1b0] sm:$0xff]  ;;  %v119_v32 = vld [vmem:[#allocation5 + $0x1e8] sm:$0xff]  ;;  %v2595_v36 = vpack.c.bf16 %v110_v23, %v106_v19  ;;  %v2655_v61 = vsub.s32 %v275_v58, %v277_v59 }
  0x3c   :  { %55 = vst [vmem:[#allocation8] sm:$0x3] %v54_v25  ;;  %v117_v33 = vld [vmem:[#allocation5 + $0x1d8] sm:$0xff]  ;;  %v2599_v37 = vpack.c.bf16 %v112_v29, %v108_v24  ;;  %v2601_v38 = vpack.c.bf16 %v119_v32, %v115_v30  ;;  %v114_v41 = vld [vmem:[#allocation5 + $0x1c0] sm:$0xff]  ;;  %v116_v45 = vld [vmem:[#allocation5 + $0x1d0] sm:$0xff] }
  0x3d   :  { %1740 = vmatpush1.bf16.msra.mxu0 %v2568_v63  ;;  %v121_v34 = vld [vmem:[#allocation5 + $0x1f8] sm:$0xff]  ;;  %v118_v42 = vld [vmem:[#allocation5 + $0x1e0] sm:$0xff]  ;;  %v120_v46 = vld [vmem:[#allocation5 + $0x1f0] sm:$0xff] }
  0x3e   :  { %1772 = vmatpush1.bf16.msra.mxu1 %v2572_v1  ;;  %1742 = vmatprep.subr.bf16.mxu0 %v2574_v2  ;;  %v2604_v43 = vpack.c.bf16 %v121_v34, %v117_v33  ;;  %v2607_v47 = vpack.c.bf16 %v118_v42, %v114_v41  ;;  %v2611_v48 = vpack.c.bf16 %v120_v46, %v116_v45  ;;  %v56_v50 = vld [vmem:[%s2954_s3] sm:$0x3]  ;;  %s2451_s3 = smov [#allocation8]  }
  0x3f   :  { %1774 = vmatprep.subr.bf16.mxu1 %v2577_v7  ;;  %57 = vst [vmem:[#allocation10] sm:$0x3] %v56_v50  ;;  %v124_v14 = vld [vmem:[#allocation2] sm:$0xff]  ;;  %s1694_s26 = sshll.u32 %s2451_s3, 4  ;;  %s1695_s26 = int_to_ptr.vmem [resolvable:$true] %s1694_s26 }
  0x40   :  { %s2369_s7 = scalar_lea.vmem %s1695_s26, 32  ;;  %p2374_p3 = scmp.lt.s32.totalorder %s1695_s26, %s1695_s26 }
  0x41   :  { %1744 = vmatpush1.bf16.msra.mxu0 %v2580_v16  ;;  %p2370_p2 = scmp.ne.s32.totalorder %s1695_s26, %s2369_s7  ;;  %p2375_p4 = scmp.lt.s32.totalorder %s2369_s7, %s2369_s7 }
  0x42   :  { %1776 = vmatpush1.bf16.msra.mxu1 %v2584_v20  ;;  %1746 = vmatprep.subr.bf16.mxu0 %v2586_v21 }
  0x43   :  { %1778 = vmatprep.subr.bf16.mxu1 %v2592_v28  ;;  %v122_v49 = vld [vmem:[#allocation8] sm:$0x3]  ;;  %p2376_p5 = por %p2375_p4, %p2374_p3 }
  0x45   :  { %1748 = vmatpush1.bf16.msra.mxu0 %v2595_v36  ;;  %p2377_p6 = pnand %p2376_p5, %p2370_p2 }
  0x46   :  { %1780 = vmatpush1.bf16.msra.mxu1 %v2599_v37  ;;  %1750 = vmatprep.subr.bf16.mxu0 %v2601_v38  ;;  %v123_v46 = vld [vmem:[#allocation10] sm:$0x3] }
  0x47   :  { %1782 = vmatprep.subr.bf16.mxu1 %v2604_v43 }
  0x49   :  { %1752 = vmatpush1.bf16.msra.mxu0 %v2607_v47 }
  0x4a   :  { %1784 = vmatpush1.bf16.msra.mxu1 %v2611_v48  ;;  %1786 = vmatprep.subr.bf16.mxu0 %v2517_v4 }
  0x4b   :  { %1818 = vmatprep.subr.bf16.mxu1 %v2519_v8 }
  0x4c   :  { %190 = vmatmul.mubr.f32.vlgmr.msra.gmra.mrb[0].mxu0 %v122_v49 }
  0x4d   :  { %261 = vmatmul.mubr.f32.vlgmr.msra.gmra.mrb[0].mxu1 %v122_v49  ;;  %1788 = vmatpush1.bf16.msra.mxu0 %v2521_v9 }
  0x4e   :  { %1820 = vmatpush1.bf16.msra.mxu1 %v2524_v13  ;;  %1790 = vmatprep.subr.bf16.mxu0 %v2528_v17 }
  0x4f   :  { %1822 = vmatprep.subr.bf16.mxu1 %v2530_v18  ;;  %382 = vmatprep.mubr.f32.mxu0 %v2449_v0 }
  0x50   :  { %453 = vmatprep.mubr.f32.mxu1 %v2449_v0 }
  0x51   :  { %1792 = vmatpush1.bf16.msra.mxu0 %v2533_v22 }
  0x52   :  { %1824 = vmatpush1.bf16.msra.mxu1 %v2537_v26  ;;  %1794 = vmatprep.subr.bf16.mxu0 %v2539_v27 }
  0x53   :  { %1826 = vmatprep.subr.bf16.mxu1 %v2541_v31 }
  0x55   :  { %1796 = vmatpush1.bf16.msra.mxu0 %v2544_v35 }
  0x56   :  { %1828 = vmatpush1.bf16.msra.mxu1 %v2548_v39  ;;  %1798 = vmatprep.subr.bf16.mxu0 %v2550_v40 }
  0x57   :  { %1830 = vmatprep.subr.bf16.mxu1 %v2553_v44 }
  0x59   :  { %1800 = vmatpush1.bf16.msra.mxu0 %v2556_v51 }
  0x5a   :  { %1832 = vmatpush1.bf16.msra.mxu1 %v2560_v52  ;;  %1802 = vmatprep.subr.bf16.mxu0 %v2562_v53 }
  0x5b   :  { %1834 = vmatprep.subr.bf16.mxu1 %v2565_v57 }
  0x5d   :  { %1804 = vmatpush1.bf16.msra.mxu0 %v2568_v63 }
  0x5e   :  { %1836 = vmatpush1.bf16.msra.mxu1 %v2572_v1  ;;  %1806 = vmatprep.subr.bf16.mxu0 %v2574_v2 }
  0x5f   :  { %1838 = vmatprep.subr.bf16.mxu1 %v2577_v7 }
  0x61   :  { %1808 = vmatpush1.bf16.msra.mxu0 %v2580_v16 }
  0x62   :  { %1840 = vmatpush1.bf16.msra.mxu1 %v2584_v20  ;;  %1810 = vmatprep.subr.bf16.mxu0 %v2586_v21 }
  0x63   :  { %1842 = vmatprep.subr.bf16.mxu1 %v2592_v28 }
  0x65   :  { %1812 = vmatpush1.bf16.msra.mxu0 %v2595_v36 }
  0x66   :  { %1844 = vmatpush1.bf16.msra.mxu1 %v2599_v37  ;;  %1814 = vmatprep.subr.bf16.mxu0 %v2601_v38 }
  0x67   :  { %1846 = vmatprep.subr.bf16.mxu1 %v2604_v43 }
  0x69   :  { %1816 = vmatpush1.bf16.msra.mxu0 %v2607_v47 }
  0x6a   :  { %1848 = vmatpush1.bf16.msra.mxu1 %v2611_v48  ;;  %1850 = vmatprep.subr.bf16.mxu0 %v2517_v4 }
  0x6b   :  { %1882 = vmatprep.subr.bf16.mxu1 %v2519_v8 }
 0x11f   :  { %v191_v60 = vpop.f32.mrb[0].mxu0 }
 0x120   :  { %v262_v62 = vpop.f32.mrb[0].mxu1  ;;  %v193_v3 = vpop.f32.mrb[1].mxu0 }
 0x121   :  { %v271_v5 = vcombine.low %v191_v60, %v193_v3  ;;  %v264_v6 = vpop.f32.mrb[1].mxu1 }
 0x122   :  { %v272_v10 = vcombine.low %v262_v62, %v264_v6 }
 0x123   :  { %v279_v11 = vrot.slane %v271_v5, %v2655_v61 }
 0x124   :  { %v286_v12 = vrot.slane %v272_v10, %v2655_v61 }
 0x126   :  { %v287_v15 = vcombine.low %v279_v11, %v286_v12 }
 0x128   :  { %v289_v19 = vadd.f32 %v287_v15, %v124_v14 }
 0x12a   :  { %v290_v23 = vmul.f32 0.5, %v289_v19  ;;  %v295_v24 = vrot.slane %v289_v19, 2  ;;  %v301_v29 = vrot.slane %v289_v19, 4  ;;  %v304_v30 = vrot.slane %v289_v19, 6 }
 0x12c   :  { %2245 = vtanh.f32 %v290_v23  ;;  %v297_v25 = vmul.f32 0.5, %v295_v24  ;;  %v306_v32 = vmul.f32 0.5, %v304_v30  ;;  %v317_v23 = vld [vmem:[#allocation2 + $0x8] sm:$0xff] }
 0x12e   :  { %2247 = vtanh.f32 %v297_v25 }
 0x12f   :  { %2249 = vtanh.f32 %v301_v29 }
 0x130   :  { %2251 = vtanh.f32 %v306_v32 }
 0x136   :  { %v2246_v33 = vpop.eup %2245 }
 0x137   :  { %v292_v34 = vadd.f32 1.0, %v2246_v33 }
 0x138   :  { %v2248_v41 = vpop.eup %2247 }
 0x139   :  { %v293_v42 = vmul.f32 0.5, %v292_v34  ;;  %v299_v45 = vadd.f32 1.0, %v2248_v41  ;;  %v2250_v50 = vpop.eup %2249 }
 0x13a   :  { %v2252_v58 = vpop.eup %2251 }
 0x13b   :  { %v300_v49 = vmul.f32 0.5, %v299_v45  ;;  %v311_v55 = vmul.f32 %v2250_v50, %v293_v42  ;;  %v308_v59 = vadd.f32 1.0, %v2252_v58 }
 0x13d   :  { %v310_v54 = vmul.f32 %v300_v49, %v123_v46  ;;  %v309_v60 = vmul.f32 0.5, %v308_v59 }
 0x13f   :  { %v2659_v56 = vadd.f32 %v311_v55, %v310_v54 }
 0x141   :  { %2253 = vtanh.f32 %v2659_v56 }
 0x14b   :  { %v2254_v62 = vpop.eup %2253 }
 0x14c   :  { %v314_v3 = vmul.f32 %v2254_v62, %v309_v60 }
 0x14e   :  { %315 = vst [vmem:[#allocation7] sm:$0x3] %v314_v3  ;;  %383 = vmatmul.mubr.f32.vlgmr.msra.gmra.mrb[2].mxu0 %v314_v3  ;;  %454 = vmatmul.mubr.f32.vlgmr.msra.gmra.mrb[2].mxu1 %v314_v3 }
 0x14f   :  { %1852 = vmatpush1.bf16.msra.mxu0 %v2521_v9  ;;  %1884 = vmatpush1.bf16.msra.mxu1 %v2524_v13 }
 0x150   :  { %1854 = vmatprep.subr.bf16.mxu0 %v2528_v17  ;;  %1886 = vmatprep.subr.bf16.mxu1 %v2530_v18 }
 0x151   :  { %576 = vmatprep.mubr.f32.mxu0 %v2449_v0  ;;  %647 = vmatprep.mubr.f32.mxu1 %v2449_v0 }
 0x153   :  { %1856 = vmatpush1.bf16.msra.mxu0 %v2533_v22  ;;  %1888 = vmatpush1.bf16.msra.mxu1 %v2537_v26 }
 0x154   :  { %1858 = vmatprep.subr.bf16.mxu0 %v2539_v27  ;;  %1890 = vmatprep.subr.bf16.mxu1 %v2541_v31 }
 0x157   :  { %1860 = vmatpush1.bf16.msra.mxu0 %v2544_v35  ;;  %1892 = vmatpush1.bf16.msra.mxu1 %v2548_v39 }
 0x158   :  { %1862 = vmatprep.subr.bf16.mxu0 %v2550_v40  ;;  %1894 = vmatprep.subr.bf16.mxu1 %v2553_v44 }
 0x15b   :  { %1864 = vmatpush1.bf16.msra.mxu0 %v2556_v51  ;;  %1896 = vmatpush1.bf16.msra.mxu1 %v2560_v52 }
 0x15c   :  { %1866 = vmatprep.subr.bf16.mxu0 %v2562_v53  ;;  %1898 = vmatprep.subr.bf16.mxu1 %v2565_v57 }
 0x15f   :  { %1868 = vmatpush1.bf16.msra.mxu0 %v2568_v63  ;;  %1900 = vmatpush1.bf16.msra.mxu1 %v2572_v1 }
 0x160   :  { %1870 = vmatprep.subr.bf16.mxu0 %v2574_v2  ;;  %1902 = vmatprep.subr.bf16.mxu1 %v2577_v7 }
 0x163   :  { %1872 = vmatpush1.bf16.msra.mxu0 %v2580_v16  ;;  %1904 = vmatpush1.bf16.msra.mxu1 %v2584_v20 }
 0x164   :  { %1874 = vmatprep.subr.bf16.mxu0 %v2586_v21  ;;  %1906 = vmatprep.subr.bf16.mxu1 %v2592_v28 }
 0x167   :  { %1876 = vmatpush1.bf16.msra.mxu0 %v2595_v36  ;;  %1908 = vmatpush1.bf16.msra.mxu1 %v2599_v37 }
 0x168   :  { %1878 = vmatprep.subr.bf16.mxu0 %v2601_v38  ;;  %1910 = vmatprep.subr.bf16.mxu1 %v2604_v43 }
 0x16b   :  { %1880 = vmatpush1.bf16.msra.mxu0 %v2607_v47  ;;  %1912 = vmatpush1.bf16.msra.mxu1 %v2611_v48 }
 0x16c   :  { %1914 = vmatprep.subr.bf16.mxu0 %v2517_v4  ;;  %1946 = vmatprep.subr.bf16.mxu1 %v2519_v8 }
 0x221   :  { %v384_v5 = vpop.f32.mrb[2].mxu0  ;;  %v455_v6 = vpop.f32.mrb[2].mxu1 }
 0x222   :  { %v386_v10 = vpop.f32.mrb[3].mxu0  ;;  %v457_v11 = vpop.f32.mrb[3].mxu1 }
 0x223   :  { %v464_v12 = vcombine.low %v384_v5, %v386_v10  ;;  %v465_v14 = vcombine.low %v455_v6, %v457_v11 }
 0x225   :  { %v472_v15 = vrot.slane %v464_v12, %v2655_v61  ;;  %v479_v19 = vrot.slane %v465_v14, %v2655_v61 }
 0x227   :  { %v480_v24 = vcombine.low %v472_v15, %v479_v19 }
 0x229   :  { %v482_v25 = vadd.f32 %v480_v24, %v317_v23 }
 0x22b   :  { %v483_v29 = vmul.f32 0.5, %v482_v25  ;;  %v488_v30 = vrot.slane %v482_v25, 2  ;;  %v494_v33 = vrot.slane %v482_v25, 4  ;;  %v497_v34 = vrot.slane %v482_v25, 6  ;;  %v511_v25 = vld [vmem:[#allocation2 + $0x10] sm:$0xff] }
 0x22d   :  { %2255 = vtanh.f32 %v483_v29  ;;  %v490_v32 = vmul.f32 0.5, %v488_v30  ;;  %v499_v41 = vmul.f32 0.5, %v497_v34 }
 0x22f   :  { %2257 = vtanh.f32 %v490_v32 }
 0x230   :  { %2259 = vtanh.f32 %v494_v33 }
 0x231   :  { %2261 = vtanh.f32 %v499_v41 }
 0x237   :  { %v2256_v42 = vpop.eup %2255 }
 0x238   :  { %v485_v45 = vadd.f32 1.0, %v2256_v42 }
 0x239   :  { %v2258_v46 = vpop.eup %2257 }
 0x23a   :  { %v486_v49 = vmul.f32 0.5, %v485_v45  ;;  %v492_v50 = vadd.f32 1.0, %v2258_v46  ;;  %v2260_v55 = vpop.eup %2259 }
 0x23b   :  { %v2262_v62 = vpop.eup %2261 }
 0x23c   :  { %v493_v54 = vmul.f32 0.5, %v492_v50  ;;  %v504_v59 = vmul.f32 %v2260_v55, %v486_v49  ;;  %v501_v3 = vadd.f32 1.0, %v2262_v62 }
 0x23e   :  { %v503_v58 = vmul.f32 %v493_v54, %v2659_v56  ;;  %v502_v5 = vmul.f32 0.5, %v501_v3 }
 0x240   :  { %v2699_v60 = vadd.f32 %v504_v59, %v503_v58 }
 0x242   :  { %2263 = vtanh.f32 %v2699_v60 }
 0x24c   :  { %v2264_v6 = vpop.eup %2263 }
 0x24d   :  { %v507_v10 = vmul.f32 %v2264_v6, %v502_v5 }
 0x24f   :  { %509 = vst [vmem:[#allocation7 + $0x2] sm:$0x3] %v507_v10  ;;  %577 = vmatmul.mubr.f32.vlgmr.msra.gmra.mrb[4].mxu0 %v507_v10  ;;  %648 = vmatmul.mubr.f32.vlgmr.msra.gmra.mrb[4].mxu1 %v507_v10 }
 0x250   :  { %1916 = vmatpush1.bf16.msra.mxu0 %v2521_v9  ;;  %1948 = vmatpush1.bf16.msra.mxu1 %v2524_v13 }
 0x251   :  { %1918 = vmatprep.subr.bf16.mxu0 %v2528_v17  ;;  %1950 = vmatprep.subr.bf16.mxu1 %v2530_v18 }
 0x252   :  { %770 = vmatprep.mubr.f32.mxu0 %v2449_v0  ;;  %841 = vmatprep.mubr.f32.mxu1 %v2449_v0 }
 0x254   :  { %1920 = vmatpush1.bf16.msra.mxu0 %v2533_v22  ;;  %1952 = vmatpush1.bf16.msra.mxu1 %v2537_v26 }
 0x255   :  { %1922 = vmatprep.subr.bf16.mxu0 %v2539_v27  ;;  %1954 = vmatprep.subr.bf16.mxu1 %v2541_v31 }
 0x258   :  { %1924 = vmatpush1.bf16.msra.mxu0 %v2544_v35  ;;  %1956 = vmatpush1.bf16.msra.mxu1 %v2548_v39 }
 0x259   :  { %1926 = vmatprep.subr.bf16.mxu0 %v2550_v40  ;;  %1958 = vmatprep.subr.bf16.mxu1 %v2553_v44 }
 0x25c   :  { %1928 = vmatpush1.bf16.msra.mxu0 %v2556_v51  ;;  %1960 = vmatpush1.bf16.msra.mxu1 %v2560_v52 }
 0x25d   :  { %1930 = vmatprep.subr.bf16.mxu0 %v2562_v53  ;;  %1962 = vmatprep.subr.bf16.mxu1 %v2565_v57 }
 0x260   :  { %1932 = vmatpush1.bf16.msra.mxu0 %v2568_v63  ;;  %1964 = vmatpush1.bf16.msra.mxu1 %v2572_v1 }
 0x261   :  { %1934 = vmatprep.subr.bf16.mxu0 %v2574_v2  ;;  %1966 = vmatprep.subr.bf16.mxu1 %v2577_v7 }
 0x264   :  { %1936 = vmatpush1.bf16.msra.mxu0 %v2580_v16  ;;  %1968 = vmatpush1.bf16.msra.mxu1 %v2584_v20 }
 0x265   :  { %1938 = vmatprep.subr.bf16.mxu0 %v2586_v21  ;;  %1970 = vmatprep.subr.bf16.mxu1 %v2592_v28 }
 0x268   :  { %1940 = vmatpush1.bf16.msra.mxu0 %v2595_v36  ;;  %1972 = vmatpush1.bf16.msra.mxu1 %v2599_v37 }
 0x269   :  { %1942 = vmatprep.subr.bf16.mxu0 %v2601_v38  ;;  %1974 = vmatprep.subr.bf16.mxu1 %v2604_v43 }
 0x26c   :  { %1944 = vmatpush1.bf16.msra.mxu0 %v2607_v47  ;;  %1976 = vmatpush1.bf16.msra.mxu1 %v2611_v48 }
 0x26d   :  { %1978 = vmatprep.subr.bf16.mxu0 %v2517_v4  ;;  %2010 = vmatprep.subr.bf16.mxu1 %v2519_v8 }
 0x322   :  { %v578_v56 = vpop.f32.mrb[4].mxu0  ;;  %v649_v11 = vpop.f32.mrb[4].mxu1 }
 0x323   :  { %v580_v12 = vpop.f32.mrb[5].mxu0  ;;  %v651_v14 = vpop.f32.mrb[5].mxu1 }
 0x324   :  { %v658_v15 = vcombine.low %v578_v56, %v580_v12  ;;  %v659_v19 = vcombine.low %v649_v11, %v651_v14 }
 0x326   :  { %v666_v23 = vrot.slane %v658_v15, %v2655_v61  ;;  %v673_v24 = vrot.slane %v659_v19, %v2655_v61 }
 0x328   :  { %v674_v29 = vcombine.low %v666_v23, %v673_v24 }
 0x32a   :  { %v676_v30 = vadd.f32 %v674_v29, %v511_v25 }
 0x32c   :  { %v677_v32 = vmul.f32 0.5, %v676_v30  ;;  %v682_v33 = vrot.slane %v676_v30, 2  ;;  %v688_v41 = vrot.slane %v676_v30, 4  ;;  %v691_v42 = vrot.slane %v676_v30, 6  ;;  %v705_v30 = vld [vmem:[#allocation2 + $0x18] sm:$0xff] }
 0x32e   :  { %2265 = vtanh.f32 %v677_v32  ;;  %v684_v34 = vmul.f32 0.5, %v682_v33  ;;  %v693_v45 = vmul.f32 0.5, %v691_v42 }
 0x330   :  { %2267 = vtanh.f32 %v684_v34 }
 0x331   :  { %2269 = vtanh.f32 %v688_v41 }
 0x332   :  { %2271 = vtanh.f32 %v693_v45 }
 0x338   :  { %v2266_v46 = vpop.eup %2265 }
 0x339   :  { %v679_v49 = vadd.f32 1.0, %v2266_v46 }
 0x33a   :  { %v2268_v50 = vpop.eup %2267 }
 0x33b   :  { %v680_v54 = vmul.f32 0.5, %v679_v49  ;;  %v686_v55 = vadd.f32 1.0, %v2268_v50  ;;  %v2270_v59 = vpop.eup %2269 }
 0x33c   :  { %v2272_v6 = vpop.eup %2271 }
 0x33d   :  { %v687_v58 = vmul.f32 0.5, %v686_v55  ;;  %v698_v3 = vmul.f32 %v2270_v59, %v680_v54  ;;  %v695_v10 = vadd.f32 1.0, %v2272_v6 }
 0x33f   :  { %v697_v62 = vmul.f32 %v687_v58, %v2699_v60  ;;  %v696_v56 = vmul.f32 0.5, %v695_v10 }
 0x341   :  { %v2739_v5 = vadd.f32 %v698_v3, %v697_v62 }
 0x343   :  { %2273 = vtanh.f32 %v2739_v5 }
 0x34d   :  { %v2274_v11 = vpop.eup %2273 }
 0x34e   :  { %v701_v12 = vmul.f32 %v2274_v11, %v696_v56 }
 0x350   :  { %703 = vst [vmem:[#allocation7 + $0x4] sm:$0x3] %v701_v12  ;;  %771 = vmatmul.mubr.f32.vlgmr.msra.gmra.mrb[6].mxu0 %v701_v12  ;;  %842 = vmatmul.mubr.f32.vlgmr.msra.gmra.mrb[6].mxu1 %v701_v12 }
 0x351   :  { %1980 = vmatpush1.bf16.msra.mxu0 %v2521_v9  ;;  %2012 = vmatpush1.bf16.msra.mxu1 %v2524_v13 }
 0x352   :  { %1982 = vmatprep.subr.bf16.mxu0 %v2528_v17  ;;  %2014 = vmatprep.subr.bf16.mxu1 %v2530_v18 }
 0x353   :  { %964 = vmatprep.mubr.f32.mxu0 %v2449_v0  ;;  %1035 = vmatprep.mubr.f32.mxu1 %v2449_v0 }
 0x355   :  { %1984 = vmatpush1.bf16.msra.mxu0 %v2533_v22  ;;  %2016 = vmatpush1.bf16.msra.mxu1 %v2537_v26 }
 0x356   :  { %1986 = vmatprep.subr.bf16.mxu0 %v2539_v27  ;;  %2018 = vmatprep.subr.bf16.mxu1 %v2541_v31 }
 0x359   :  { %1988 = vmatpush1.bf16.msra.mxu0 %v2544_v35  ;;  %2020 = vmatpush1.bf16.msra.mxu1 %v2548_v39 }
 0x35a   :  { %1990 = vmatprep.subr.bf16.mxu0 %v2550_v40  ;;  %2022 = vmatprep.subr.bf16.mxu1 %v2553_v44 }
 0x35d   :  { %1992 = vmatpush1.bf16.msra.mxu0 %v2556_v51  ;;  %2024 = vmatpush1.bf16.msra.mxu1 %v2560_v52 }
 0x35e   :  { %1994 = vmatprep.subr.bf16.mxu0 %v2562_v53  ;;  %2026 = vmatprep.subr.bf16.mxu1 %v2565_v57 }
 0x361   :  { %1996 = vmatpush1.bf16.msra.mxu0 %v2568_v63  ;;  %2028 = vmatpush1.bf16.msra.mxu1 %v2572_v1 }
 0x362   :  { %1998 = vmatprep.subr.bf16.mxu0 %v2574_v2  ;;  %2030 = vmatprep.subr.bf16.mxu1 %v2577_v7 }
 0x365   :  { %2000 = vmatpush1.bf16.msra.mxu0 %v2580_v16  ;;  %2032 = vmatpush1.bf16.msra.mxu1 %v2584_v20 }
 0x366   :  { %2002 = vmatprep.subr.bf16.mxu0 %v2586_v21  ;;  %2034 = vmatprep.subr.bf16.mxu1 %v2592_v28 }
 0x369   :  { %2004 = vmatpush1.bf16.msra.mxu0 %v2595_v36  ;;  %2036 = vmatpush1.bf16.msra.mxu1 %v2599_v37 }
 0x36a   :  { %2006 = vmatprep.subr.bf16.mxu0 %v2601_v38  ;;  %2038 = vmatprep.subr.bf16.mxu1 %v2604_v43 }
 0x36d   :  { %2008 = vmatpush1.bf16.msra.mxu0 %v2607_v47  ;;  %2040 = vmatpush1.bf16.msra.mxu1 %v2611_v48 }
 0x36e   :  { %2042 = vmatprep.subr.bf16.mxu0 %v2517_v4  ;;  %2074 = vmatprep.subr.bf16.mxu1 %v2519_v8 }
 0x423   :  { %v772_v60 = vpop.f32.mrb[6].mxu0  ;;  %v843_v14 = vpop.f32.mrb[6].mxu1 }
 0x424   :  { %v774_v15 = vpop.f32.mrb[7].mxu0  ;;  %v845_v19 = vpop.f32.mrb[7].mxu1 }
 0x425   :  { %v852_v23 = vcombine.low %v772_v60, %v774_v15  ;;  %v853_v24 = vcombine.low %v843_v14, %v845_v19 }
 0x427   :  { %v860_v25 = vrot.slane %v852_v23, %v2655_v61  ;;  %v867_v29 = vrot.slane %v853_v24, %v2655_v61 }
 0x429   :  { %v868_v32 = vcombine.low %v860_v25, %v867_v29 }
 0x42b   :  { %v870_v33 = vadd.f32 %v868_v32, %v705_v30 }
 0x42d   :  { %v871_v34 = vmul.f32 0.5, %v870_v33  ;;  %v876_v41 = vrot.slane %v870_v33, 2  ;;  %v882_v45 = vrot.slane %v870_v33, 4  ;;  %v885_v46 = vrot.slane %v870_v33, 6  ;;  %v899_v33 = vld [vmem:[#allocation2 + $0x20] sm:$0xff] }
 0x42f   :  { %2275 = vtanh.f32 %v871_v34  ;;  %v878_v42 = vmul.f32 0.5, %v876_v41  ;;  %v887_v49 = vmul.f32 0.5, %v885_v46 }
 0x431   :  { %2277 = vtanh.f32 %v878_v42 }
 0x432   :  { %2279 = vtanh.f32 %v882_v45 }
 0x433   :  { %2281 = vtanh.f32 %v887_v49 }
 0x439   :  { %v2276_v50 = vpop.eup %2275 }
 0x43a   :  { %v873_v54 = vadd.f32 1.0, %v2276_v50 }
 0x43b   :  { %v2278_v55 = vpop.eup %2277 }
 0x43c   :  { %v874_v58 = vmul.f32 0.5, %v873_v54  ;;  %v880_v59 = vadd.f32 1.0, %v2278_v55  ;;  %v2280_v3 = vpop.eup %2279 }
 0x43d   :  { %v2282_v11 = vpop.eup %2281 }
 0x43e   :  { %v881_v62 = vmul.f32 0.5, %v880_v59  ;;  %v892_v10 = vmul.f32 %v2280_v3, %v874_v58  ;;  %v889_v12 = vadd.f32 1.0, %v2282_v11 }
 0x440   :  { %v891_v6 = vmul.f32 %v881_v62, %v2739_v5  ;;  %v890_v60 = vmul.f32 0.5, %v889_v12 }
 0x442   :  { %v2779_v56 = vadd.f32 %v892_v10, %v891_v6 }
 0x444   :  { %2283 = vtanh.f32 %v2779_v56 }
 0x44e   :  { %v2284_v14 = vpop.eup %2283 }
 0x44f   :  { %v895_v15 = vmul.f32 %v2284_v14, %v890_v60 }
 0x451   :  { %897 = vst [vmem:[#allocation7 + $0x6] sm:$0x3] %v895_v15  ;;  %965 = vmatmul.mubr.f32.vlgmr.msra.gmra.mrb[8].mxu0 %v895_v15  ;;  %1036 = vmatmul.mubr.f32.vlgmr.msra.gmra.mrb[8].mxu1 %v895_v15 }
 0x452   :  { %2044 = vmatpush1.bf16.msra.mxu0 %v2521_v9  ;;  %2076 = vmatpush1.bf16.msra.mxu1 %v2524_v13 }
 0x453   :  { %2046 = vmatprep.subr.bf16.mxu0 %v2528_v17  ;;  %2078 = vmatprep.subr.bf16.mxu1 %v2530_v18 }
 0x454   :  { %1158 = vmatprep.mubr.f32.mxu0 %v2449_v0  ;;  %1229 = vmatprep.mubr.f32.mxu1 %v2449_v0 }
 0x456   :  { %2048 = vmatpush1.bf16.msra.mxu0 %v2533_v22  ;;  %2080 = vmatpush1.bf16.msra.mxu1 %v2537_v26 }
 0x457   :  { %2050 = vmatprep.subr.bf16.mxu0 %v2539_v27  ;;  %2082 = vmatprep.subr.bf16.mxu1 %v2541_v31 }
 0x45a   :  { %2052 = vmatpush1.bf16.msra.mxu0 %v2544_v35  ;;  %2084 = vmatpush1.bf16.msra.mxu1 %v2548_v39 }
 0x45b   :  { %2054 = vmatprep.subr.bf16.mxu0 %v2550_v40  ;;  %2086 = vmatprep.subr.bf16.mxu1 %v2553_v44 }
 0x45e   :  { %2056 = vmatpush1.bf16.msra.mxu0 %v2556_v51  ;;  %2088 = vmatpush1.bf16.msra.mxu1 %v2560_v52 }
 0x45f   :  { %2058 = vmatprep.subr.bf16.mxu0 %v2562_v53  ;;  %2090 = vmatprep.subr.bf16.mxu1 %v2565_v57 }
 0x462   :  { %2060 = vmatpush1.bf16.msra.mxu0 %v2568_v63  ;;  %2092 = vmatpush1.bf16.msra.mxu1 %v2572_v1 }
 0x463   :  { %2062 = vmatprep.subr.bf16.mxu0 %v2574_v2  ;;  %2094 = vmatprep.subr.bf16.mxu1 %v2577_v7 }
 0x466   :  { %2064 = vmatpush1.bf16.msra.mxu0 %v2580_v16  ;;  %2096 = vmatpush1.bf16.msra.mxu1 %v2584_v20 }
 0x467   :  { %2066 = vmatprep.subr.bf16.mxu0 %v2586_v21  ;;  %2098 = vmatprep.subr.bf16.mxu1 %v2592_v28 }
 0x46a   :  { %2068 = vmatpush1.bf16.msra.mxu0 %v2595_v36  ;;  %2100 = vmatpush1.bf16.msra.mxu1 %v2599_v37 }
 0x46b   :  { %2070 = vmatprep.subr.bf16.mxu0 %v2601_v38  ;;  %2102 = vmatprep.subr.bf16.mxu1 %v2604_v43 }
 0x46e   :  { %2072 = vmatpush1.bf16.msra.mxu0 %v2607_v47  ;;  %2104 = vmatpush1.bf16.msra.mxu1 %v2611_v48 }
 0x46f   :  { %2106 = vmatprep.subr.bf16.mxu0 %v2517_v4  ;;  %2138 = vmatprep.subr.bf16.mxu1 %v2519_v8 }
 0x524   :  { %v966_v5 = vpop.f32.mrb[8].mxu0  ;;  %v1037_v19 = vpop.f32.mrb[8].mxu1 }
 0x525   :  { %v968_v23 = vpop.f32.mrb[9].mxu0  ;;  %v1039_v24 = vpop.f32.mrb[9].mxu1 }
 0x526   :  { %v1046_v25 = vcombine.low %v966_v5, %v968_v23  ;;  %v1047_v29 = vcombine.low %v1037_v19, %v1039_v24 }
 0x528   :  { %v1054_v30 = vrot.slane %v1046_v25, %v2655_v61  ;;  %v1061_v32 = vrot.slane %v1047_v29, %v2655_v61 }
 0x52a   :  { %v1062_v34 = vcombine.low %v1054_v30, %v1061_v32 }
 0x52c   :  { %v1064_v41 = vadd.f32 %v1062_v34, %v899_v33 }
 0x52e   :  { %v1065_v42 = vmul.f32 0.5, %v1064_v41  ;;  %v1070_v45 = vrot.slane %v1064_v41, 2  ;;  %v1076_v49 = vrot.slane %v1064_v41, 4  ;;  %v1079_v50 = vrot.slane %v1064_v41, 6  ;;  %v1093_v41 = vld [vmem:[#allocation2 + $0x28] sm:$0xff] }
 0x530   :  { %2285 = vtanh.f32 %v1065_v42  ;;  %v1072_v46 = vmul.f32 0.5, %v1070_v45  ;;  %v1081_v54 = vmul.f32 0.5, %v1079_v50 }
 0x532   :  { %2287 = vtanh.f32 %v1072_v46 }
 0x533   :  { %2289 = vtanh.f32 %v1076_v49 }
 0x534   :  { %2291 = vtanh.f32 %v1081_v54 }
 0x53a   :  { %v2286_v55 = vpop.eup %2285 }
 0x53b   :  { %v1067_v58 = vadd.f32 1.0, %v2286_v55 }
 0x53c   :  { %v2288_v59 = vpop.eup %2287 }
 0x53d   :  { %v1068_v62 = vmul.f32 0.5, %v1067_v58  ;;  %v1074_v3 = vadd.f32 1.0, %v2288_v59  ;;  %v2290_v10 = vpop.eup %2289 }
 0x53e   :  { %v2292_v14 = vpop.eup %2291 }
 0x53f   :  { %v1075_v6 = vmul.f32 0.5, %v1074_v3  ;;  %v1086_v12 = vmul.f32 %v2290_v10, %v1068_v62  ;;  %v1083_v15 = vadd.f32 1.0, %v2292_v14 }
 0x541   :  { %v1085_v11 = vmul.f32 %v1075_v6, %v2779_v56  ;;  %v1084_v5 = vmul.f32 0.5, %v1083_v15 }
 0x543   :  { %v2819_v60 = vadd.f32 %v1086_v12, %v1085_v11 }
 0x545   :  { %2293 = vtanh.f32 %v2819_v60 }
 0x54f   :  { %v2294_v19 = vpop.eup %2293 }
 0x550   :  { %v1089_v23 = vmul.f32 %v2294_v19, %v1084_v5 }
 0x552   :  { %1091 = vst [vmem:[#allocation7 + $0x8] sm:$0x3] %v1089_v23  ;;  %1159 = vmatmul.mubr.f32.vlgmr.msra.gmra.mrb[10].mxu0 %v1089_v23  ;;  %1230 = vmatmul.mubr.f32.vlgmr.msra.gmra.mrb[10].mxu1 %v1089_v23 }
 0x553   :  { %2108 = vmatpush1.bf16.msra.mxu0 %v2521_v9  ;;  %2140 = vmatpush1.bf16.msra.mxu1 %v2524_v13 }
 0x554   :  { %2110 = vmatprep.subr.bf16.mxu0 %v2528_v17  ;;  %2142 = vmatprep.subr.bf16.mxu1 %v2530_v18 }
 0x555   :  { %1352 = vmatprep.mubr.f32.mxu0 %v2449_v0  ;;  %1423 = vmatprep.mubr.f32.mxu1 %v2449_v0 }
 0x557   :  { %2112 = vmatpush1.bf16.msra.mxu0 %v2533_v22  ;;  %2144 = vmatpush1.bf16.msra.mxu1 %v2537_v26 }
 0x558   :  { %2114 = vmatprep.subr.bf16.mxu0 %v2539_v27  ;;  %2146 = vmatprep.subr.bf16.mxu1 %v2541_v31 }
 0x55b   :  { %2116 = vmatpush1.bf16.msra.mxu0 %v2544_v35  ;;  %2148 = vmatpush1.bf16.msra.mxu1 %v2548_v39 }
 0x55c   :  { %2118 = vmatprep.subr.bf16.mxu0 %v2550_v40  ;;  %2150 = vmatprep.subr.bf16.mxu1 %v2553_v44 }
 0x55f   :  { %2120 = vmatpush1.bf16.msra.mxu0 %v2556_v51  ;;  %2152 = vmatpush1.bf16.msra.mxu1 %v2560_v52 }
 0x560   :  { %2122 = vmatprep.subr.bf16.mxu0 %v2562_v53  ;;  %2154 = vmatprep.subr.bf16.mxu1 %v2565_v57 }
 0x563   :  { %2124 = vmatpush1.bf16.msra.mxu0 %v2568_v63  ;;  %2156 = vmatpush1.bf16.msra.mxu1 %v2572_v1 }
 0x564   :  { %2126 = vmatprep.subr.bf16.mxu0 %v2574_v2  ;;  %2158 = vmatprep.subr.bf16.mxu1 %v2577_v7 }
 0x567   :  { %2128 = vmatpush1.bf16.msra.mxu0 %v2580_v16  ;;  %2160 = vmatpush1.bf16.msra.mxu1 %v2584_v20 }
 0x568   :  { %2130 = vmatprep.subr.bf16.mxu0 %v2586_v21  ;;  %2162 = vmatprep.subr.bf16.mxu1 %v2592_v28 }
 0x56b   :  { %2132 = vmatpush1.bf16.msra.mxu0 %v2595_v36  ;;  %2164 = vmatpush1.bf16.msra.mxu1 %v2599_v37 }
 0x56c   :  { %2134 = vmatprep.subr.bf16.mxu0 %v2601_v38  ;;  %2166 = vmatprep.subr.bf16.mxu1 %v2604_v43 }
 0x56f   :  { %2136 = vmatpush1.bf16.msra.mxu0 %v2607_v47  ;;  %2168 = vmatpush1.bf16.msra.mxu1 %v2611_v48 }
 0x570   :  { %2170 = vmatprep.subr.bf16.mxu0 %v2517_v4  ;;  %2202 = vmatprep.subr.bf16.mxu1 %v2519_v8 }
 0x625   :  { %v1160_v56 = vpop.f32.mrb[10].mxu0  ;;  %v1231_v24 = vpop.f32.mrb[10].mxu1 }
 0x626   :  { %v1162_v25 = vpop.f32.mrb[11].mxu0  ;;  %v1233_v29 = vpop.f32.mrb[11].mxu1 }
 0x627   :  { %v1240_v30 = vcombine.low %v1160_v56, %v1162_v25  ;;  %v1241_v32 = vcombine.low %v1231_v24, %v1233_v29 }
 0x629   :  { %v1248_v33 = vrot.slane %v1240_v30, %v2655_v61  ;;  %v1255_v34 = vrot.slane %v1241_v32, %v2655_v61 }
 0x62b   :  { %v1256_v42 = vcombine.low %v1248_v33, %v1255_v34 }
 0x62d   :  { %v1258_v45 = vadd.f32 %v1256_v42, %v1093_v41  ;;  %v1481_v42 = vld [vmem:[#allocation2 + $0x38] sm:$0xff] }
 0x62f   :  { %v1259_v46 = vmul.f32 0.5, %v1258_v45  ;;  %v1264_v49 = vrot.slane %v1258_v45, 2  ;;  %v1270_v4 = vrot.slane %v1258_v45, 4  ;;  %v1273_v8 = vrot.slane %v1258_v45, 6 }
 0x631   :  { %2295 = vtanh.f32 %v1259_v46  ;;  %v1266_v50 = vmul.f32 0.5, %v1264_v49  ;;  %v1275_v54 = vmul.f32 0.5, %v1273_v8 }
 0x633   :  { %2297 = vtanh.f32 %v1266_v50 }
 0x634   :  { %2299 = vtanh.f32 %v1270_v4 }
 0x635   :  { %2301 = vtanh.f32 %v1275_v54 }
 0x63b   :  { %v2296_v55 = vpop.eup %2295 }
 0x63c   :  { %v1261_v58 = vadd.f32 1.0, %v2296_v55 }
 0x63d   :  { %v2298_v59 = vpop.eup %2297 }
 0x63e   :  { %v1262_v62 = vmul.f32 0.5, %v1261_v58  ;;  %v1268_v3 = vadd.f32 1.0, %v2298_v59  ;;  %v2300_v10 = vpop.eup %2299 }
 0x63f   :  { %v2302_v15 = vpop.eup %2301 }
 0x640   :  { %v1269_v6 = vmul.f32 0.5, %v1268_v3  ;;  %v1280_v12 = vmul.f32 %v2300_v10, %v1262_v62  ;;  %v1277_v5 = vadd.f32 1.0, %v2302_v15 }
 0x642   :  { %v1279_v11 = vmul.f32 %v1269_v6, %v2819_v60  ;;  %v1278_v19 = vmul.f32 0.5, %v1277_v5 }
 0x644   :  { %v2859_v14 = vadd.f32 %v1280_v12, %v1279_v11 }
 0x646   :  { %2303 = vtanh.f32 %v2859_v14 }
 0x650   :  { %v2304_v23 = vpop.eup %2303 }
 0x651   :  { %v1283_v56 = vmul.f32 %v2304_v23, %v1278_v19 }
 0x653   :  { %1285 = vst [vmem:[#allocation7 + $0xa] sm:$0x3] %v1283_v56  ;;  %1353 = vmatmul.mubr.f32.vlgmr.msra.gmra.mrb[12].mxu0 %v1283_v56  ;;  %1424 = vmatmul.mubr.f32.vlgmr.msra.gmra.mrb[12].mxu1 %v1283_v56 }
 0x654   :  { %2172 = vmatpush1.bf16.msra.mxu0 %v2521_v9  ;;  %2204 = vmatpush1.bf16.msra.mxu1 %v2524_v13 }
 0x655   :  { %2174 = vmatprep.subr.bf16.mxu0 %v2528_v17  ;;  %2206 = vmatprep.subr.bf16.mxu1 %v2530_v18 }
 0x656   :  { %1546 = vmatprep.mubr.f32.mxu0 %v2449_v0  ;;  %1617 = vmatprep.mubr.f32.mxu1 %v2449_v0 }
 0x658   :  { %2176 = vmatpush1.bf16.msra.mxu0 %v2533_v22  ;;  %2208 = vmatpush1.bf16.msra.mxu1 %v2537_v26 }
 0x659   :  { %2178 = vmatprep.subr.bf16.mxu0 %v2539_v27  ;;  %2210 = vmatprep.subr.bf16.mxu1 %v2541_v31  ;;  %v1287_v31 = vld [vmem:[#allocation2 + $0x30] sm:$0xff] }
 0x65c   :  { %2180 = vmatpush1.bf16.msra.mxu0 %v2544_v35  ;;  %2212 = vmatpush1.bf16.msra.mxu1 %v2548_v39 }
 0x65d   :  { %2182 = vmatprep.subr.bf16.mxu0 %v2550_v40  ;;  %2214 = vmatprep.subr.bf16.mxu1 %v2553_v44 }
 0x660   :  { %2184 = vmatpush1.bf16.msra.mxu0 %v2556_v51  ;;  %2216 = vmatpush1.bf16.msra.mxu1 %v2560_v52 }
 0x661   :  { %2186 = vmatprep.subr.bf16.mxu0 %v2562_v53  ;;  %2218 = vmatprep.subr.bf16.mxu1 %v2565_v57 }
 0x664   :  { %2188 = vmatpush1.bf16.msra.mxu0 %v2568_v63  ;;  %2220 = vmatpush1.bf16.msra.mxu1 %v2572_v1 }
 0x665   :  { %2190 = vmatprep.subr.bf16.mxu0 %v2574_v2  ;;  %2222 = vmatprep.subr.bf16.mxu1 %v2577_v7 }
 0x668   :  { %2192 = vmatpush1.bf16.msra.mxu0 %v2580_v16  ;;  %2224 = vmatpush1.bf16.msra.mxu1 %v2584_v20 }
 0x669   :  { %2194 = vmatprep.subr.bf16.mxu0 %v2586_v21  ;;  %2226 = vmatprep.subr.bf16.mxu1 %v2592_v28 }
 0x66c   :  { %2196 = vmatpush1.bf16.msra.mxu0 %v2595_v36  ;;  %2228 = vmatpush1.bf16.msra.mxu1 %v2599_v37 }
 0x66d   :  { %2198 = vmatprep.subr.bf16.mxu0 %v2601_v38  ;;  %2230 = vmatprep.subr.bf16.mxu1 %v2604_v43 }
 0x670   :  { %2200 = vmatpush1.bf16.msra.mxu0 %v2607_v47  ;;  %2232 = vmatpush1.bf16.msra.mxu1 %v2611_v48 }
 0x726   :  { %v1354_v0 = vpop.f32.mrb[12].mxu0  ;;  %v1425_v9 = vpop.f32.mrb[12].mxu1 }
 0x727   :  { %v1356_v13 = vpop.f32.mrb[13].mxu0  ;;  %v1427_v17 = vpop.f32.mrb[13].mxu1 }
 0x728   :  { %v1434_v18 = vcombine.low %v1354_v0, %v1356_v13  ;;  %v1435_v22 = vcombine.low %v1425_v9, %v1427_v17 }
 0x72a   :  { %v1442_v26 = vrot.slane %v1434_v18, %v2655_v61  ;;  %v1449_v27 = vrot.slane %v1435_v22, %v2655_v61 }
 0x72c   :  { %v1450_v35 = vcombine.low %v1442_v26, %v1449_v27 }
 0x72e   :  { %v1452_v39 = vadd.f32 %v1450_v35, %v1287_v31 }
 0x730   :  { %v1453_v40 = vmul.f32 0.5, %v1452_v39  ;;  %v1458_v44 = vrot.slane %v1452_v39, 2  ;;  %v1464_v52 = vrot.slane %v1452_v39, 4  ;;  %v1467_v53 = vrot.slane %v1452_v39, 6 }
 0x732   :  { %2305 = vtanh.f32 %v1453_v40  ;;  %v1460_v51 = vmul.f32 0.5, %v1458_v44  ;;  %v1469_v57 = vmul.f32 0.5, %v1467_v53 }
 0x734   :  { %2307 = vtanh.f32 %v1460_v51 }
 0x735   :  { %2309 = vtanh.f32 %v1464_v52 }
 0x736   :  { %2311 = vtanh.f32 %v1469_v57 }
 0x73c   :  { %v2306_v63 = vpop.eup %2305 }
 0x73d   :  { %v1455_v1 = vadd.f32 1.0, %v2306_v63 }
 0x73e   :  { %v2308_v2 = vpop.eup %2307 }
 0x73f   :  { %v1456_v7 = vmul.f32 0.5, %v1455_v1  ;;  %v1462_v16 = vadd.f32 1.0, %v2308_v2  ;;  %v2310_v21 = vpop.eup %2309 }
 0x740   :  { %v2312_v38 = vpop.eup %2311 }
 0x741   :  { %v1463_v20 = vmul.f32 0.5, %v1462_v16  ;;  %v1474_v36 = vmul.f32 %v2310_v21, %v1456_v7  ;;  %v1471_v43 = vadd.f32 1.0, %v2312_v38 }
 0x743   :  { %v1473_v28 = vmul.f32 %v1463_v20, %v2859_v14  ;;  %v1472_v47 = vmul.f32 0.5, %v1471_v43 }
 0x745   :  { %v1475_v37 = vadd.f32 %v1474_v36, %v1473_v28 }
 0x747   :  { %2313 = vtanh.f32 %v1475_v37 }
 0x751   :  { %v2314_v48 = vpop.eup %2313 }
 0x752   :  { %v1477_v60 = vmul.f32 %v2314_v48, %v1472_v47 }
 0x754   :  { %1479 = vst [vmem:[#allocation7 + $0xc] sm:$0x3] %v1477_v60  ;;  %1547 = vmatmul.mubr.f32.vlgmr.msra.gmra.mrb[14].mxu0 %v1477_v60  ;;  %1618 = vmatmul.mubr.f32.vlgmr.msra.gmra.mrb[14].mxu1 %v1477_v60 }
 0x827   :  { %v1548_v24 = vpop.f32.mrb[14].mxu0  ;;  %v1619_v25 = vpop.f32.mrb[14].mxu1 }
 0x828   :  { %v1550_v29 = vpop.f32.mrb[15].mxu0  ;;  %v1621_v30 = vpop.f32.mrb[15].mxu1 }
 0x829   :  { %v1628_v32 = vcombine.low %v1548_v24, %v1550_v29  ;;  %v1629_v33 = vcombine.low %v1619_v25, %v1621_v30 }
 0x82b   :  { %v1636_v34 = vrot.slane %v1628_v32, %v2655_v61  ;;  %v1643_v41 = vrot.slane %v1629_v33, %v2655_v61 }
 0x82d   :  { %v1644_v45 = vcombine.low %v1636_v34, %v1643_v41 }
 0x82f   :  { %v1646_v46 = vadd.f32 %v1644_v45, %v1481_v42 }
 0x831   :  { %v1647_v49 = vmul.f32 0.5, %v1646_v46  ;;  %v1652_v50 = vrot.slane %v1646_v46, 2  ;;  %v1658_v8 = vrot.slane %v1646_v46, 4  ;;  %v1661_v54 = vrot.slane %v1646_v46, 6 }
 0x833   :  { %2315 = vtanh.f32 %v1647_v49  ;;  %v1654_v4 = vmul.f32 0.5, %v1652_v50  ;;  %v1663_v55 = vmul.f32 0.5, %v1661_v54 }
 0x835   :  { %2317 = vtanh.f32 %v1654_v4 }
 0x836   :  { %2319 = vtanh.f32 %v1658_v8 }
 0x837   :  { %2321 = vtanh.f32 %v1663_v55 }
 0x83d   :  { %v2316_v58 = vpop.eup %2315 }
 0x83e   :  { %v1649_v59 = vadd.f32 1.0, %v2316_v58 }
 0x83f   :  { %v2318_v62 = vpop.eup %2317 }
 0x840   :  { %v1650_v3 = vmul.f32 0.5, %v1649_v59  ;;  %v1656_v6 = vadd.f32 1.0, %v2318_v62  ;;  %v2320_v61 = vpop.eup %2319 }
 0x841   :  { %v2322_v15 = vpop.eup %2321 }
 0x842   :  { %v1657_v10 = vmul.f32 0.5, %v1656_v6  ;;  %v1668_v12 = vmul.f32 %v2320_v61, %v1650_v3  ;;  %v1665_v5 = vadd.f32 1.0, %v2322_v15 }
 0x844   :  { %v1667_v11 = vmul.f32 %v1657_v10, %v1475_v37  ;;  %v1666_v19 = vmul.f32 0.5, %v1665_v5 }
 0x846   :  { %v1669_v14 = vadd.f32 %v1668_v12, %v1667_v11 }
 0x848   :  { %1675 = vst [vmem:[#allocation10] sm:$0x3] %v1669_v14  ;;  %2323 = vtanh.f32 %v1669_v14 }
 0x852   :  { %v2324_v23 = vpop.eup %2323 }
 0x853   :  { %v1671_v56 = vmul.f32 %v2324_v23, %v1666_v19 }
 0x855   :  { %1673 = vst [vmem:[#allocation7 + $0xe] sm:$0x3] %v1671_v56  ;;  %1674 = vst [vmem:[#allocation8] sm:$0x3] %v1671_v56 }
 0x856   :  { %2380 = shalt.err (!%p2377_p6)
}
 0x857   :  { %s2381_s10 = scalar_lea.hbm %s2956_s5, 32 }
 0x858   :  { %p2382_p7 = scmp.ne.s32.totalorder %s2956_s5, %s2381_s10  ;;  %p2385_p8 = scmp.lt.u32.totalorder %s2381_s10, %s2956_s5 }
 0x85a   :  { %p2387_p9 = pnand %p2385_p8, %p2382_p7 }
 0x85c   :  { %2390 = shalt.err (!%p2387_p9)
}
 0x85d   :  { %1697 = dma.vmem_to_hbm [thread:$0]  %s1695_s26, 32, %s2956_s5, [#allocation9]  }
 0x85e   :  { %s2391_s17 = scalar_lea.vmem %s2899_s28, 256  ;;  %p2396_p11 = scmp.lt.s32.totalorder %s2899_s28, %s2899_s28 }
 0x85f   :  { %p2392_p10 = scmp.ne.s32.totalorder %s2899_s28, %s2391_s17  ;;  %p2397_p12 = scmp.lt.s32.totalorder %s2391_s17, %s2391_s17 }
 0x861   :  { %p2398_p13 = por %p2397_p12, %p2396_p11 }
 0x863   :  { %p2399_p0 = pnand %p2398_p13, %p2392_p10 }
 0x865   :  { %2402 = shalt.err (!%p2399_p0)
}
 0x866   :  { %s2403_s20 = scalar_lea.hbm %s2955_s4, 256 }
 0x867   :  { %p2404_p1 = scmp.ne.s32.totalorder %s2955_s4, %s2403_s20  ;;  %p2407_p2 = scmp.lt.u32.totalorder %s2403_s20, %s2955_s4 }
 0x869   :  { %p2409_p3 = pnand %p2407_p2, %p2404_p1 }
 0x86b   :  { %2412 = shalt.err (!%p2409_p3)
}
 0x86c   :  { %s2454_s5 = smov 2   ;;  %s2413_s25 = scalar_lea.vmem %s2901_s30, 32 }
 0x86d   :  { %1687 = dma.vmem_to_hbm [thread:$0]  %s2899_s28, 256, %s2955_s4, [#allocation4], %s2448_s21, %s2448_s21, %s2454_s5  }
 0x86e   :  { %p2414_p4 = scmp.ne.s32.totalorder %s2901_s30, %s2413_s25  ;;  %p2418_p5 = scmp.lt.s32.totalorder %s2901_s30, %s2901_s30 }
 0x86f   :  { %p2419_p6 = scmp.lt.s32.totalorder %s2413_s25, %s2413_s25 }
 0x871   :  { %p2420_p7 = por %p2419_p6, %p2418_p5 }
 0x873   :  { %p2421_p8 = pnand %p2420_p7, %p2414_p4 }
 0x875   :  { %2424 = shalt.err (!%p2421_p8)
}
 0x876   :  { %s2425_s27 = scalar_lea.hbm %s2957_s6, 32 }
 0x877   :  { %p2426_p9 = scmp.ne.s32.totalorder %s2957_s6, %s2425_s27  ;;  %p2429_p10 = scmp.lt.u32.totalorder %s2425_s27, %s2957_s6 }
 0x879   :  { %p2431_p11 = pnand %p2429_p10, %p2426_p9 }
 0x87b   :  { %2434 = shalt.err (!%p2431_p11)
}
 0x87c   :  { %1707 = dma.vmem_to_hbm [thread:$0]  %s2901_s30, 32, %s2957_s6, [#allocation9]  }
 0x87d   :  { %2439 = dma.done.wait [#allocation4], 256  }
 0x87e   :  { %2440 = vsyncadd [#allocation4], 4294967040 }
 0x87f   :  { %2441 = dma.done.wait [#allocation9], 64  }
 0x880   :  { %2442 = vsyncadd [#allocation9], 4294967232 }
 0x881   :  { %1717 = vsyncpa [#allocation3], 1 }
 0x882   :  { %1718 = vsyncpa [#allocation6], 1 }
 0x883   :  { %1719 = vsyncpa [#allocation4], 1 }
 0x884   :  { %1720 = vsyncpa [#allocation9], 1 }

</bundles_post_ra>
